<compile_context>
chip_gen: v7x
topology: tpu7x:2x2x1
jax: 0.10.0
libtpu: 0.0.40
codegen_flags: <defaults>
</compile_context>

<pallas_src>
import jax
import jax.numpy as jnp
from jax import lax
from jax.experimental import pallas as pl
from jax.experimental.pallas import tpu as pltpu


def _round_up(x, m):
    return (x + m - 1) // m * m


def _pick_tile(total, unit, max_tile, prefer_even_count=False):
    """Largest multiple-of-`unit` divisor of `total` that is <= max_tile.

    With prefer_even_count=True, prefer divisors that give an even number of
    tiles (balances the two TensorCores on v7x; harmless on v5e/v6e)."""
    units = total // unit
    divs = [d for d in range(1, units + 1)
            if units % d == 0 and d * unit <= max_tile]
    best = max(divs)  # d == 1 always qualifies (unit <= max_tile by design)
    if prefer_even_count:
        even = [d for d in divs if (units // d) % 2 == 0]
        if even:
            best = max(even)
    return best * unit


def graph_convolution(x, weight, bias_lin, adj, *, max_tm=512, max_tk=1024):
    """x: [N, F_in] f32, weight: [F_out, F_in] (PyTorch Linear layout),
    bias_lin: [F_out] f32, adj: [N, N] f32  ->  tanh(adj @ (x @ W^T + b)) f32."""
    n, f_in = x.shape
    f_out = weight.shape[0]

    # Lane-dense feature padding; 8/128-aligned node dims.
    f_in_p = _round_up(f_in, 128)
    f_out_p = _round_up(f_out, 128)
    n_rows = _round_up(n, 8)      # adj rows / output rows
    n_cols = _round_up(n, 128)    # adj cols / x & support rows (contraction)

    # Divisor tiles: (almost) no pad in adj, even row-tile count for v7x.
    tm = _pick_tile(n_rows, 8, max_tm, prefer_even_count=True)
    tk = _pick_tile(n_cols, 128, max_tk)

    # Tiny host-side prep (x / W / bias only).  adj is left untouched when the
    # node count is already aligned -> no extra HBM round trip of the big tensor.
    x_p = jnp.pad(x, ((0, n_cols - n), (0, f_in_p - f_in))).astype(jnp.bfloat16)
    w_p = jnp.pad(weight.T, ((0, f_in_p - f_in), (0, f_out_p - f_out))).astype(jnp.bfloat16)
    b_p = jnp.pad(bias_lin.reshape(1, f_out),
                  ((0, 0), (0, f_out_p - f_out))).astype(jnp.float32)
    if (n_rows, n_cols) != (n, n):
        adj_in = jnp.pad(adj, ((0, n_rows - n), (0, n_cols - n)))
    else:
        adj_in = adj

    def kernel(x_ref, w_ref, b_ref, adj_ref, o_ref, sup_ref):
        k = pl.program_id(1)

        # Build the full support matrix once per row-tile sweep (k == 0) into
        # the persistent VMEM scratch; also init the resident output block.
        @pl.when(k == 0)
        def _():
            s = jnp.dot(x_ref[...], w_ref[...],
                        preferred_element_type=jnp.float32) + b_ref[...]
            rows = lax.broadcasted_iota(jnp.int32, s.shape, 0)
            s = jnp.where(rows < n, s, 0.0)        # zero the padded support rows
            sup_ref[...] = s.astype(sup_ref.dtype)
            o_ref[...] = jnp.zeros_like(o_ref)

        # Contract this adj tile against the matching resident support rows.
        start = pl.multiple_of(k * tk, 128)
        sup_blk = sup_ref[pl.ds(start, tk), :]
        o_ref[...] += jnp.dot(adj_ref[...].astype(jnp.bfloat16), sup_blk,
                              preferred_element_type=jnp.float32)

        @pl.when(k == pl.num_programs(1) - 1)
        def _():
            o_ref[...] = jnp.tanh(o_ref[...])      # finalize once, on the EUP

    out_p = pl.pallas_call(
        kernel,
        out_shape=jax.ShapeDtypeStruct((n_rows, f_out_p), jnp.float32),
        grid_spec=pltpu.PrefetchScalarGridSpec(
            num_scalar_prefetch=0,
            grid=(n_rows // tm, n_cols // tk),
            in_specs=[
                pl.BlockSpec((n_cols, f_in_p), lambda i, k: (0, 0)),    # x (resident)
                pl.BlockSpec((f_in_p, f_out_p), lambda i, k: (0, 0)),   # W^T (resident)
                pl.BlockSpec((1, f_out_p), lambda i, k: (0, 0)),        # bias
                pl.BlockSpec((tm, tk), lambda i, k: (i, k)),            # adj tile (f32)
            ],
            out_specs=pl.BlockSpec((tm, f_out_p), lambda i, k: (i, 0)),
            scratch_shapes=[pltpu.VMEM((n_cols, f_out_p), jnp.bfloat16)],
        ),
        compiler_params=pltpu.CompilerParams(
            dimension_semantics=("parallel", "arbitrary"),
            vmem_limit_bytes=32 * 1024 * 1024),
    )(x_p, w_p, b_p, adj_in)

    return out_p[:n, :f_out]


if __name__ == "__main__":
    key = jax.random.PRNGKey(0)
    k_x, k_adj, k_w, k_b = jax.random.split(key, 4)

    # Small shapes consistent with the module's forward (adj is [N, N]).
    n_nodes = 640
    in_features = 16
    out_features = 32

    x = jax.random.normal(k_x, (n_nodes, in_features), dtype=jnp.float32)
    adj = jax.random.uniform(k_adj, (n_nodes, n_nodes), dtype=jnp.float32)
    adj = adj / jnp.sqrt(jnp.float32(n_nodes))   # keep pre-tanh values sane

    # Deterministic init mimicking nn.Linear's uniform(-1/sqrt(fan_in), ...).
    bound = 1.0 / jnp.sqrt(jnp.float32(in_features))
    weight = jax.random.uniform(k_w, (out_features, in_features),
                                dtype=jnp.float32, minval=-bound, maxval=bound)
    bias_lin = jax.random.uniform(k_b, (out_features,),
                                  dtype=jnp.float32, minval=-bound, maxval=bound)

    out = graph_convolution(x, weight, bias_lin, adj)
    out = jax.block_until_ready(out)
    assert out.shape == (n_nodes, out_features)

    # Reference with the same bf16 operand precision as the kernel (tight check).
    xb = x.astype(jnp.bfloat16)
    wb = weight.astype(jnp.bfloat16)
    ab = adj.astype(jnp.bfloat16)
    sup_ref = lax.dot_general(xb, wb, (((1,), (1,)), ((), ())),
                              preferred_element_type=jnp.float32) + bias_lin
    ref_bf16 = jnp.tanh(jnp.dot(ab, sup_ref.astype(jnp.bfloat16),
                                preferred_element_type=jnp.float32))
    assert jnp.allclose(out, ref_bf16, atol=3e-3, rtol=3e-3), float(
        jnp.max(jnp.abs(out - ref_bf16)))

    # Loose sanity check against full-f32 math (bf16 operands are an
    # intentional precision trade-off; tanh saturation keeps this tight enough).
    ref_f32 = jnp.tanh(adj @ (x @ weight.T + bias_lin))
    assert jnp.allclose(out, ref_f32, atol=0.2, rtol=0.2)

    print("KERNEL_OK")
</pallas_src>

<mosaic_0001>
module attributes {stable_mosaic.version = 11 : i64} {
  func.func @kernel(%arg0: i32, %arg1: i32, %arg2: memref<640x128xbf16, #tpu.memory_space<vmem>>, %arg3: memref<128x128xbf16, #tpu.memory_space<vmem>>, %arg4: memref<1x128xf32, #tpu.memory_space<vmem>>, %arg5: memref<320x640xf32, #tpu.memory_space<vmem>>, %arg6: memref<320x128xf32, #tpu.memory_space<vmem>>, %arg7: memref<640x128xbf16, #tpu.memory_space<vmem>>) attributes {dimension_semantics = [#tpu.dimension_semantics<parallel>, #tpu.dimension_semantics<arbitrary>], iteration_bounds = array<i64: 2, 1>, scalar_prefetch = 0 : i64, scratch_operands = 1 : i64, tpu.core_type = #tpu.core_type<tc>, window_params = [{pipeline_mode = #tpu.pipeline_mode<synchronous>, transform_indices = @transform_0, window_bounds = array<i64: 640, 128>}, {pipeline_mode = #tpu.pipeline_mode<synchronous>, transform_indices = @transform_1, window_bounds = array<i64: 128, 128>}, {pipeline_mode = #tpu.pipeline_mode<synchronous>, transform_indices = @transform_2, window_bounds = array<i64: 1, 128>}, {transform_indices = @transform_3, window_bounds = array<i64: 320, 640>}, {transform_indices = @transform_4, window_bounds = array<i64: 320, 128>}]} {
    %c0_i32 = arith.constant 0 : i32
    %0 = arith.cmpi eq, %arg1, %c0_i32 : i32
    %1 = arith.extui %0 : i1 to i32
    %c0_i32_0 = arith.constant 0 : i32
    %2 = arith.cmpi ne, %1, %c0_i32_0 : i32
    scf.if %2 {
      %c0_9 = arith.constant 0 : index
      %c0_10 = arith.constant 0 : index
      %16 = vector.load %arg2[%c0_9, %c0_10] : memref<640x128xbf16, #tpu.memory_space<vmem>>, vector<640x128xbf16>
      %c0_11 = arith.constant 0 : index
      %c0_12 = arith.constant 0 : index
      %17 = vector.load %arg3[%c0_11, %c0_12] : memref<128x128xbf16, #tpu.memory_space<vmem>>, vector<128x128xbf16>
      %cst_13 = arith.constant dense<0.000000e+00> : vector<640x128xf32>
      %18 = tpu.matmul %16, %17, %cst_13 {dimension_numbers = #tpu.dot_dimension_numbers<[1], [0], [0], [1], [0, 0, 1, 1], [], []>} : vector<640x128xbf16>, vector<128x128xbf16>, vector<640x128xf32> -> vector<640x128xf32>
      %c0_14 = arith.constant 0 : index
      %c0_15 = arith.constant 0 : index
      %19 = vector.load %arg4[%c0_14, %c0_15] : memref<1x128xf32, #tpu.memory_space<vmem>>, vector<1x128xf32>
      %20 = vector.broadcast %19 : vector<1x128xf32> to vector<640x128xf32>
      %21 = arith.addf %18, %20 : vector<640x128xf32>
      %22 = tpu.iota {dimensions = array<i32: 0>} : vector<640x128xi32>
      %c640_i32_16 = arith.constant 640 : i32
      %23 = vector.broadcast %c640_i32_16 : i32 to vector<640x128xi32>
      %24 = arith.cmpi slt, %22, %23 : vector<640x128xi32>
      %cst_17 = arith.constant 0.000000e+00 : f32
      %25 = vector.broadcast %cst_17 : f32 to vector<640x128xf32>
      %26 = arith.select %24, %21, %25 : vector<640x128xi1>, vector<640x128xf32>
      %27 = arith.truncf %26 : vector<640x128xf32> to vector<640x128xbf16>
      %c0_18 = arith.constant 0 : index
      %c0_19 = arith.constant 0 : index
      %28 = vector.load %arg7[%c0_18, %c0_19] : memref<640x128xbf16, #tpu.memory_space<vmem>>, vector<640x128xbf16>
      tpu.vector_store %arg7[%c0_18, %c0_19], %27 {strides = array<i32>} : memref<640x128xbf16, #tpu.memory_space<vmem>>, vector<640x128xbf16>,
      %cst_20 = arith.constant 0.000000e+00 : f32
      %29 = vector.broadcast %cst_20 : f32 to vector<320x128xf32>
      %c0_21 = arith.constant 0 : index
      %c0_22 = arith.constant 0 : index
      %30 = vector.load %arg6[%c0_21, %c0_22] : memref<320x128xf32, #tpu.memory_space<vmem>>, vector<320x128xf32>
      tpu.vector_store %arg6[%c0_21, %c0_22], %29 {strides = array<i32>} : memref<320x128xf32, #tpu.memory_space<vmem>>, vector<320x128xf32>,
    } else {
    }
    %c640_i32 = arith.constant 640 : i32
    %3 = arith.muli %arg1, %c640_i32 : i32
    %4 = tpu.assume_multiple %3, 128 : i32
    %5 = arith.index_cast %4 : i32 to index
    %c0 = arith.constant 0 : index
    %6 = vector.load %arg7[%5, %c0] : memref<640x128xbf16, #tpu.memory_space<vmem>>, vector<640x128xbf16>
    %c0_1 = arith.constant 0 : index
    %c0_2 = arith.constant 0 : index
    %7 = vector.load %arg6[%c0_1, %c0_2] : memref<320x128xf32, #tpu.memory_space<vmem>>, vector<320x128xf32>
    %c0_3 = arith.constant 0 : index
    %c0_4 = arith.constant 0 : index
    %8 = vector.load %arg5[%c0_3, %c0_4] : memref<320x640xf32, #tpu.memory_space<vmem>>, vector<320x640xf32>
    %9 = arith.truncf %8 : vector<320x640xf32> to vector<320x640xbf16>
    %cst = arith.constant dense<0.000000e+00> : vector<320x128xf32>
    %10 = tpu.matmul %9, %6, %cst {dimension_numbers = #tpu.dot_dimension_numbers<[1], [0], [0], [1], [0, 0, 1, 1], [], []>} : vector<320x640xbf16>, vector<640x128xbf16>, vector<320x128xf32> -> vector<320x128xf32>
    %11 = arith.addf %7, %10 : vector<320x128xf32>
    %c0_5 = arith.constant 0 : index
    %c0_6 = arith.constant 0 : index
    %12 = vector.load %arg6[%c0_5, %c0_6] : memref<320x128xf32, #tpu.memory_space<vmem>>, vector<320x128xf32>
    tpu.vector_store %arg6[%c0_5, %c0_6], %11 {strides = array<i32>} : memref<320x128xf32, #tpu.memory_space<vmem>>, vector<320x128xf32>,
    %c0_i32_7 = arith.constant 0 : i32
    %13 = arith.cmpi eq, %arg1, %c0_i32_7 : i32
    %14 = arith.extui %13 : i1 to i32
    %c0_i32_8 = arith.constant 0 : i32
    %15 = arith.cmpi ne, %14, %c0_i32_8 : i32
    scf.if %15 {
      %c0_9 = arith.constant 0 : index
      %c0_10 = arith.constant 0 : index
      %16 = vector.load %arg6[%c0_9, %c0_10] : memref<320x128xf32, #tpu.memory_space<vmem>>, vector<320x128xf32>
      %17 = math.tanh %16 : vector<320x128xf32>
      %c0_11 = arith.constant 0 : index
      %c0_12 = arith.constant 0 : index
      %18 = vector.load %arg6[%c0_11, %c0_12] : memref<320x128xf32, #tpu.memory_space<vmem>>, vector<320x128xf32>
      tpu.vector_store %arg6[%c0_11, %c0_12], %17 {strides = array<i32>} : memref<320x128xf32, #tpu.memory_space<vmem>>, vector<320x128xf32>,
    } else {
    }
    return
  }
  func.func @transform_0(%arg0: i32, %arg1: i32) -> (i32, i32) {
    %c0_i32 = arith.constant 0 : i32
    %c0_i32_0 = arith.constant 0 : i32
    %c0_i32_1 = arith.constant 0 : i32
    return %c0_i32, %c0_i32_0 : i32, i32
  }
  func.func @transform_1(%arg0: i32, %arg1: i32) -> (i32, i32) {
    %c0_i32 = arith.constant 0 : i32
    %c0_i32_0 = arith.constant 0 : i32
    %c0_i32_1 = arith.constant 0 : i32
    return %c0_i32, %c0_i32_0 : i32, i32
  }
  func.func @transform_2(%arg0: i32, %arg1: i32) -> (i32, i32) {
    %c0_i32 = arith.constant 0 : i32
    %c0_i32_0 = arith.constant 0 : i32
    %c0_i32_1 = arith.constant 0 : i32
    return %c0_i32, %c0_i32_0 : i32, i32
  }
  func.func @transform_3(%arg0: i32, %arg1: i32) -> (i32, i32) {
    %c0_i32 = arith.constant 0 : i32
    return %arg0, %arg1 : i32, i32
  }
  func.func @transform_4(%arg0: i32, %arg1: i32) -> (i32, i32) {
    %c0_i32 = arith.constant 0 : i32
    %c0_i32_0 = arith.constant 0 : i32
    return %arg0, %c0_i32 : i32, i32
  }
}

</mosaic_0001>

<bundles_post_ra>
// kernel: tpu_custom_call.1
= control target key start
LH: loop header
LB: loop body
LE: loop exit
PB: predicated region body
PF: predicated region fallthrough
CT: control target
= control target key end

     0   :  { %9 = vsyncpa [#allocation4], 0  ;;  %s4323_s0 = inlined_call_operand.hbm [shape: bf16[640,128], index: 0, kind: input, shape index: {}]   ;;  %s4324_s1 = inlined_call_operand.hbm [shape: bf16[128,128], index: 1, kind: input, shape index: {}]   ;;  %s4325_s2 = inlined_call_operand.hbm [shape: f32[1,128], index: 2, kind: input, shape index: {}]   ;;  %s4326_s3 = inlined_call_operand.hbm [shape: f32[640,640], index: 3, kind: input, shape index: {}]   ;;  %s4327_s4 = inlined_call_operand.hbm [shape: f32[640,128], index: 4, kind: output, shape index: {}]  }
   0x1   :  { %10 = vsyncpa [#allocation7], 0 }
   0x2   :  { %11 = vsyncpa [#allocation10], 0 }
   0x3   :  { %13 = vsyncpa [#allocation10 + $0x1], 0 }
   0x4   :  { %14 = vsyncpa [#allocation5], 0 }
   0x5   :  { %16 = vsyncpa [#allocation5 + $0x1], 0  ;;  %s3554_s15 = smov 0   ;;  %s3556_s16 = smov 0  }
   0x6   :  { %s3558_s17 = smov 0   ;;  %s3560_s18 = smov 0  }
   0x7   :  { %s3562_s19 = smov 0   ;;  %s3564_s20 = smov 0  }
   0x8 LB: > { %4334 = sst [smem:[#allocation16_spill]] %s3495_s15  ;;  %s2686_s21 = sadd.s32 4294967295, %s3515_s20   ;;  %s3515_s20 = sphi %s3564_s20, %s22_s20   ;;  %s3511_s19 = sphi %s3562_s19, %s4357_s19   ;;  %s3507_s18 = sphi %s3560_s18, %s4356_s18   ;;  %s3503_s17 = sphi %s3558_s17, %s4355_s17   ;;  %s3499_s16 = sphi %s3556_s16, %s4354_s16   ;;  %s3495_s15 = sphi %s3554_s15, %s4353_s15  }
   0x9   : > { %s2687_s22 = sadd.s32 4294967294, %s3515_s20   ;;  %p119_p0 = scmp.ne.s32.totalorder %s3499_s16, %s3495_s15 }
   0xa   : > { %p3588_p1 = scmp.eq.s32.totalorder %s2686_s21, 0  ;;  %p3592_p2 = scmp.eq.s32.totalorder %s2686_s21, 1 }
   0xb   : > { %p149_p3 = scmp.eq.s32.totalorder %s2687_s22, 1  ;;  %p2688_p5 = scmp.ge.s32.totalorder %s3515_s20, 1 }
   0xc   : > { %s4335_s23 = scalar_select %p3588_p1, 1, 0 }
   0xd   : > { %s4336_s24 = scalar_select %p3592_p2, 1, 0 }
   0xe   : > { %p3598_p4 = por %p3588_p1, %p119_p0  ;;  %p3603_p6 = por %p149_p3, %p119_p0 }
   0xf   : > { %p156_p7 = scmp.lt.s32.totalorder %s3515_s20, 3  ;;  %s3517_s28 = smov [#allocation6]  }
  0x10   : > { %s4337_s25 = scalar_select %p3598_p4, 1, 0 }
  0x11   : > { %s4338_s26 = scalar_select %p3603_p6, 1, 0 }
  0x12   : > { %p3608_p8 = pnand %p2688_p5, %p156_p7  ;;  %s181_s29 = sshll.u32 %s3517_s28, 4  ;;  %s182_s29 = int_to_ptr.vmem [resolvable:$true] %s181_s29 }
  0x13   : > { %4339 = sst [smem:[#allocation17_spill]] %s4338_s26  ;;  %s3518_s5 = smov [#allocation3]  }
  0x14   : > { %s4340_s27 = scalar_select %p3608_p8, 1, 0 }
  0x15   : > { %p3097_p10 = pneg %p3608_p8  ;;  %s168_s6 = sshll.u32 %s3518_s5, 4  ;;  %s169_s6 = int_to_ptr.vmem [resolvable:$true] %s168_s6 }
  0x16   : > { %s3311_s9 = scalar_lea.hbm %s4324_s1, 1024 }
  0x17   : > { %p3617_p11 = pnand %p3097_p10, %p3588_p1  ;;  %p3312_p12 = scmp.ne.s32.totalorder %s4324_s1, %s3311_s9 }
  0x18   : > { %p3318_p5 = scmp.lt.u32.totalorder %s3311_s9, %s4324_s1 }
  0x19   : > { %p3629_p13 = pneg %p3617_p11 }
  0x1b   : > { %p3314_p0 = pnand %p3629_p13, %p3312_p12 }
  0x1d   : > { %p3315_p3 = pneg %p3314_p0 }
  0x1f   : > { %p3320_p7 = pnand %p3318_p5, %p3315_p3 }
  0x21   : > { %3323 = shalt.err (!%p3320_p7)
}
  0x22   : > { %s3324_s21 = scalar_lea.vmem %s182_s29, 1024  ;;  %p3332_p4 = scmp.lt.s32.totalorder %s182_s29, %s182_s29 }
  0x23   : > { %p3325_p10 = scmp.ne.s32.totalorder %s182_s29, %s3324_s21  ;;  %p3333_p1 = scmp.lt.s32.totalorder %s3324_s21, %s3324_s21 }
  0x25   : > { %p3327_p9 = pnand %p3325_p10, %p3629_p13  ;;  %p3334_p8 = por %p3333_p1, %p3332_p4 }
  0x27   : > { %p3328_p6 = pneg %p3327_p9 }
  0x29   : > { %p3335_p2 = pnand %p3334_p8, %p3328_p6 }
  0x2b   : > { %3338 = shalt.err (!%p3335_p2)
}
  0x2c   : > { %s3519_s22 = smov 64   ;;  %s3520_s28 = smov 4  }
  0x2d   : > { %3103 = dma.hbm_to_vmem [thread:$0]  (!%p3617_p11), %s4324_s1, 1024, %s182_s29, [#allocation7], %s3519_s22, %s3519_s22, %s3520_s28  }
  0x2e   : > { %s3521_s8 = smov [#allocation8]   ;;  %s3339_s13 = scalar_lea.hbm %s4323_s0, 5120 }
  0x2f   : > { %s195_s9 = sshll.u32 %s3521_s8, 4  ;;  %p3340_p1 = scmp.ne.s32.totalorder %s4323_s0, %s3339_s13  ;;  %s196_s9 = int_to_ptr.vmem [resolvable:$true] %s195_s9 }
  0x30   : > { %p3346_p6 = scmp.lt.u32.totalorder %s3339_s13, %s4323_s0 }
  0x31   : > { %p3342_p2 = pnand %p3340_p1, %p3629_p13 }
  0x33   : > { %p3343_p4 = pneg %p3342_p2 }
  0x35   : > { %p3348_p8 = pnand %p3346_p6, %p3343_p4 }
  0x37   : > { %3351 = shalt.err (!%p3348_p8)
}
  0x38   : > { %s3352_s29 = scalar_lea.vmem %s169_s6, 5120  ;;  %p3360_p3 = scmp.lt.s32.totalorder %s169_s6, %s169_s6 }
  0x39   : > { %p3353_p9 = scmp.ne.s32.totalorder %s169_s6, %s3352_s29  ;;  %p3361_p5 = scmp.lt.s32.totalorder %s3352_s29, %s3352_s29 }
  0x3b   : > { %p3355_p12 = pnand %p3353_p9, %p3629_p13  ;;  %p3362_p7 = por %p3361_p5, %p3360_p3 }
  0x3d   : > { %p3356_p0 = pneg %p3355_p12 }
  0x3f   : > { %p3363_p10 = pnand %p3362_p7, %p3356_p0 }
  0x41   : > { %3366 = shalt.err (!%p3363_p10)
}
  0x42   : > { %3100 = dma.hbm_to_vmem [thread:$0]  (!%p3617_p11), %s4323_s0, 5120, %s169_s6, [#allocation4], %s3519_s22, %s3519_s22, %s3520_s28  }
  0x43   : > { %s3367_s8 = scalar_lea.hbm %s4325_s2, 16 }
  0x44   : > { %p3368_p1 = scmp.ne.s32.totalorder %s4325_s2, %s3367_s8  ;;  %p3374_p6 = scmp.lt.u32.totalorder %s3367_s8, %s4325_s2 }
  0x46   : > { %p3370_p2 = pnand %p3368_p1, %p3629_p13 }
  0x48   : > { %p3371_p4 = pneg %p3370_p2 }
  0x4a   : > { %p3376_p8 = pnand %p3374_p6, %p3371_p4 }
  0x4c   : > { %3379 = shalt.err (!%p3376_p8)
}
  0x4d   : > { %s3380_s21 = scalar_lea.vmem %s196_s9, 16  ;;  %s3387_s6 = scalar_lea.vmem %s196_s9, 32 }
  0x4e   : > { %p3381_p9 = scmp.ne.s32.totalorder %s196_s9, %s3380_s21  ;;  %p3388_p3 = scmp.lt.s32.totalorder %s196_s9, %s196_s9 }
  0x4f   : > { %p3389_p5 = scmp.lt.s32.totalorder %s3387_s6, %s3380_s21 }
  0x50   : > { %p3383_p12 = pnand %p3381_p9, %p3629_p13 }
  0x51   : > { %p3390_p7 = por %p3389_p5, %p3388_p3 }
  0x52   : > { %p3384_p0 = pneg %p3383_p12 }
  0x54   : > { %p3391_p10 = pnand %p3390_p7, %p3384_p0 }
  0x56   : > { %3394 = shalt.err (!%p3391_p10)
}
  0x57   : > { %3106 = dma.hbm_to_vmem [thread:$0]  (!%p3617_p11), %s4325_s2, 16, %s196_s9, [#allocation7]  }
  0x58   : > { %s106_s12 = sadd.s32 1, %s3503_s17  ;;  %s34_s29 = sadd.s32 1, %s3511_s19 }
  0x59   : > { %p113_p13 = scmp.ne.s32.totalorder %s3503_s17, %s3499_s16  ;;  %p36_p1 = scmp.ge.s32.totalorder %s34_s29, 2 }
  0x5a   : > { %p114_p2 = scmp.eq.s32.totalorder %s3515_s20, 0  ;;  %p4343_p4 = scmp.ne.s32.totalorder %s4336_s24, 0 }
  0x5b   : > { %p3118_p8 = scmp.lt.s32.totalorder %s3515_s20, 2  ;;  %s4359_s29 = smov (%p36_p1, %s34_s29), 0 }
  0x5c   : > { %p3688_p6 = por %p4343_p4, %p113_p13  ;;  %p115_p9 = por %p114_p2, %p113_p13 }
  0x5d   : > { %s206_s5 = sand.u32 1, %s3503_s17   ;;  %s101_s7 = ssub.s32 %s3511_s19, %s4359_s29 }
  0x5e   : > { %p104_p12 = scmp.eq.s32.totalorder %s101_s7, 0  ;;  %s3077_s9 = smul.u32 1600, %s206_s5 }
  0x5f   : > { %p3698_p11 = pnand %p3118_p8, %p115_p9  ;;  %s3119_s26 = smul.u32 25600, %s3511_s19 }
  0x60   : > { %s3703_s24 = scalar_select %p104_p12, %s3503_s17, %s106_s12  }
  0x61   : > { %s210_s8 = scalar_lea.vmem [#allocation9], %s3077_s9  ;;  %s3709_s14 = scalar_lea.hbm %s4326_s3, %s3119_s26 }
  0x62   : > { %s220_s10 = sshll.u32 %s210_s8, 4  ;;  %s3713_s21 = scalar_lea.sflag [#allocation10], %s206_s5  ;;  %s3711_s10 = int_to_ptr.vmem [resolvable:$true] %s220_s10 }
  0x63   : > { %s3395_s6 = scalar_lea.hbm %s3709_s14, 25600  ;;  %p3397_p3 = pneg %p3698_p11 }
  0x64   : > { %p3396_p0 = scmp.ne.s32.totalorder %s3709_s14, %s3395_s6  ;;  %s3400_s12 = scalar_lea.hbm %s4326_s3, 51200 }
  0x65   : > { %p3401_p10 = scmp.lt.u32.totalorder %s3709_s14, %s4326_s3  ;;  %p3402_p13 = scmp.lt.u32.totalorder %s3400_s12, %s3395_s6 }
  0x66   : > { %p3398_p5 = pnand %p3397_p3, %p3396_p0  ;;  %p3404_p2 = scmp.lt.u32.totalorder %s3395_s6, %s3709_s14 }
  0x67   : > { %p3403_p1 = por %p3402_p13, %p3401_p10 }
  0x68   : > { %p3399_p7 = pneg %p3398_p5 }
  0x69   : > { %p3405_p4 = por %p3404_p2, %p3403_p1 }
  0x6b   : > { %p3406_p8 = pnand %p3405_p4, %p3399_p7 }
  0x6d   : > { %3409 = shalt.err (!%p3406_p8)
}
  0x6e   : > { %s3410_s5 = scalar_lea.vmem %s3711_s10, 25600  ;;  %s3522_s26 = smov [#allocation9]  }
  0x6f   : > { %p3411_p9 = scmp.ne.s32.totalorder %s3711_s10, %s3410_s5  ;;  %s3415_s8 = sshll.u32 %s3522_s26, 4  ;;  %s3416_s8 = int_to_ptr.vmem [resolvable:$false] %s3415_s8 }
  0x70   : > { %s3417_s11 = scalar_lea.vmem %s3416_s8, 51200  ;;  %p3418_p5 = scmp.lt.s32.totalorder %s3711_s10, %s3416_s8 }
  0x71   : > { %p3413_p12 = pnand %p3411_p9, %p3397_p3  ;;  %p3419_p10 = scmp.lt.s32.totalorder %s3417_s11, %s3410_s5 }
  0x73   : > { %p3414_p0 = pneg %p3413_p12  ;;  %p3420_p13 = por %p3419_p10, %p3418_p5 }
  0x75   : > { %p3421_p1 = pnand %p3420_p13, %p3414_p0 }
  0x77   : > { %3424 = shalt.err (!%p3421_p1)
}
  0x78   : > { %s3523_s13 = smov 640   ;;  %s3524_s6 = smov 40  }
  0x79   : > { %3110 = dma.hbm_to_vmem [thread:$0]  (!%p3698_p11), %s3709_s14, 25600, %s3711_s10, %s3713_s21, %s3523_s13, %s3523_s13, %s3524_s6  }
  0x7a   : > { %p4346_p3 = scmp.ne.s32.totalorder %s4340_s27, 0 }
  0x7b   : > { %p4347_p7 = scmp.ne.s32.totalorder (!%p4346_p3), %s4335_s23, 0 }
  0x7c   : > { %232 = sbr.rel (%p4346_p3) target bundleno = 952 (0x3b8), region = 36 }
  0x83   : > { %3478 = dma.done.wait (%p4347_p7), [#allocation4], 5120  }
  0x84   : > { %3480 = vsyncadd (%p4347_p7), [#allocation4], 4294962176 }
  0x85   : > { %3482 = dma.done.wait (%p4347_p7), [#allocation7], 1040  }
  0x86   : > { %3484 = vsyncadd (%p4347_p7), [#allocation7], 4294966256  ;;  %s3752_s22 = sand.u32 1, %s3499_s16   ;;  %p4348_p11 = scmp.ne.s32.totalorder %s4337_s25, 0 }
  0x87   : > { %s3079_s27 = smul.u32 1600, %s3752_s22  ;;  %s247_s15 = scalar_lea.sflag [#allocation10], %s3752_s22 }
  0x89   : > { %s3756_s10 = scalar_lea.vmem [#allocation9], %s3079_s27 }
  0x8a   : > { %3486 = dma.done.wait (%p4348_p11), %s247_s15, 25600  }
  0x8b   : > { %3488 = vsyncadd (%p4348_p11), %s247_s15, 4294941696  ;;  %v3183_v0 = vld [vmem:[#allocation6] sm:$0xff]   ;;  %v3184_v1 = vld [vmem:[#allocation6 + $0x8] sm:$0xff]   ;;  %v3525_v33 = vmov 0   ;;  %s3080_s23 = smul.u32 320, %s3752_s22  ;;  %s2556_s9 = scalar_lea.sflag [#allocation5], %s3752_s22 }
  0x8c   : > { %2827 = vmatprep.subr.bf16.mxu0 %v3183_v0  ;;  %v3185_v2 = vld [vmem:[#allocation6 + $0x10] sm:$0xff]   ;;  %v3186_v3 = vld [vmem:[#allocation6 + $0x18] sm:$0xff]   ;;  %v3191_v4 = vld [vmem:[#allocation3] sm:$0xff]   ;;  %2979 = vmatprep.subr.bf16.mxu1 %v3525_v33  ;;  %s2750_s14 = smul.u32 5120, %s3507_s18  ;;  %s3526_s18 = smov [#allocation11]  }
  0x8d   : > { %2828 = vmatpush3.bf16.msra.mxu0 %v3183_v0  ;;  %2843 = vmatprep.mubr.bf16.mxu0 %v3191_v4  ;;  %v3187_v5 = vld [vmem:[#allocation6 + $0x20] sm:$0xff]   ;;  %v3188_v6 = vld [vmem:[#allocation6 + $0x28] sm:$0xff]   ;;  %v3189_v7 = vld [vmem:[#allocation6 + $0x30] sm:$0xff]   ;;  %s4132_s25 = scalar_lea.vmem [#allocation11], %s3080_s23  ;;  %s3429_s26 = sshll.u32 %s3526_s18, 4  ;;  %s3430_s26 = int_to_ptr.vmem [resolvable:$false] %s3429_s26 }
  0x8e   : > { %2829 = vmatprep.subr.bf16.mxu0 %v3184_v1  ;;  %v3190_v8 = vld [vmem:[#allocation6 + $0x38] sm:$0xff]   ;;  %v3192_v9 = vld [vmem:[#allocation3 + $0x8] sm:$0xff]   ;;  %v3193_v10 = vld [vmem:[#allocation3 + $0x10] sm:$0xff]   ;;  %s2569_s21 = sshll.u32 %s4132_s25, 4  ;;  %s4270_s7 = scalar_lea.hbm %s4327_s4, %s2750_s14  ;;  %s4272_s21 = int_to_ptr.vmem [resolvable:$true] %s2569_s21 }
  0x8f   : > { %v3194_v11 = vld [vmem:[#allocation3 + $0x18] sm:$0xff]   ;;  %v3195_v12 = vld [vmem:[#allocation3 + $0x20] sm:$0xff]   ;;  %v3196_v13 = vld [vmem:[#allocation3 + $0x28] sm:$0xff]   ;;  %s3425_s5 = scalar_lea.vmem %s4272_s21, 5120  ;;  %s3431_s8 = scalar_lea.vmem %s3430_s26, 10240 }
  0x90   : > { %v3197_v14 = vld [vmem:[#allocation3 + $0x30] sm:$0xff]   ;;  %v3198_v15 = vld [vmem:[#allocation3 + $0x38] sm:$0xff]   ;;  %v3199_v16 = vld [vmem:[#allocation3 + $0x40] sm:$0xff]   ;;  %p3426_p2 = scmp.ne.s32.totalorder %s4272_s21, %s3425_s5  ;;  %p3432_p9 = scmp.lt.s32.totalorder %s4272_s21, %s3430_s26 }
  0x91   : > { %2830 = vmatpush3.bf16.msra.mxu0 %v3184_v1  ;;  %v3200_v17 = vld [vmem:[#allocation3 + $0x48] sm:$0xff]   ;;  %v3201_v18 = vld [vmem:[#allocation3 + $0x50] sm:$0xff]   ;;  %v3202_v19 = vld [vmem:[#allocation3 + $0x58] sm:$0xff]   ;;  %p3433_p12 = scmp.lt.s32.totalorder %s3431_s8, %s3425_s5 }
  0x92   : > { %2831 = vmatprep.subr.bf16.mxu0 %v3185_v2  ;;  %v3203_v20 = vld [vmem:[#allocation3 + $0x60] sm:$0xff]   ;;  %v3204_v21 = vld [vmem:[#allocation3 + $0x68] sm:$0xff]   ;;  %v3205_v22 = vld [vmem:[#allocation3 + $0x70] sm:$0xff]   ;;  %p3427_p4 = pnand %p3426_p2, %p3688_p6 }
  0x93   : > { %v3206_v23 = vld [vmem:[#allocation3 + $0x78] sm:$0xff]   ;;  %v3207_v24 = vld [vmem:[#allocation3 + $0x80] sm:$0xff]   ;;  %v3208_v25 = vld [vmem:[#allocation3 + $0x88] sm:$0xff]   ;;  %p3434_p0 = por %p3433_p12, %p3432_p9 }
  0x94   : > { %v3209_v26 = vld [vmem:[#allocation3 + $0x90] sm:$0xff]   ;;  %v3210_v27 = vld [vmem:[#allocation3 + $0x98] sm:$0xff]   ;;  %v3211_v28 = vld [vmem:[#allocation3 + $0xa0] sm:$0xff]   ;;  %p3428_p8 = pneg %p3427_p4 }
  0x95   : > { %2832 = vmatpush3.bf16.msra.mxu0 %v3185_v2  ;;  %v3212_v29 = vld [vmem:[#allocation3 + $0xa8] sm:$0xff]   ;;  %v3213_v30 = vld [vmem:[#allocation3 + $0xb0] sm:$0xff]   ;;  %v3214_v31 = vld [vmem:[#allocation3 + $0xb8] sm:$0xff]  }
  0x96   : > { %2833 = vmatprep.subr.bf16.mxu0 %v3186_v3  ;;  %v3215_v32 = vld [vmem:[#allocation3 + $0xc0] sm:$0xff]   ;;  %v3216_v34 = vld [vmem:[#allocation3 + $0xc8] sm:$0xff]   ;;  %v3217_v35 = vld [vmem:[#allocation3 + $0xd0] sm:$0xff]   ;;  %p3435_p5 = pnand %p3434_p0, %p3428_p8 }
  0x97   : > { %v3218_v36 = vld [vmem:[#allocation3 + $0xd8] sm:$0xff]   ;;  %v3219_v37 = vld [vmem:[#allocation3 + $0xe0] sm:$0xff]   ;;  %v3220_v38 = vld [vmem:[#allocation3 + $0xe8] sm:$0xff]  }
  0x98   : > { %v3221_v39 = vld [vmem:[#allocation3 + $0xf0] sm:$0xff]   ;;  %v3222_v40 = vld [vmem:[#allocation3 + $0xf8] sm:$0xff]   ;;  %v3223_v41 = vld [vmem:[#allocation3 + $0x100] sm:$0xff]  }
  0x99   : > { %2834 = vmatpush3.bf16.msra.mxu0 %v3186_v3  ;;  %v3224_v42 = vld [vmem:[#allocation3 + $0x108] sm:$0xff]   ;;  %v3225_v43 = vld [vmem:[#allocation3 + $0x110] sm:$0xff]   ;;  %v3226_v44 = vld [vmem:[#allocation3 + $0x118] sm:$0xff]  }
  0x9a   : > { %2835 = vmatprep.subr.bf16.mxu0 %v3187_v5  ;;  %v3227_v45 = vld [vmem:[#allocation3 + $0x120] sm:$0xff]   ;;  %v3228_v46 = vld [vmem:[#allocation3 + $0x128] sm:$0xff]   ;;  %v3229_v47 = vld [vmem:[#allocation3 + $0x130] sm:$0xff]  }
  0x9b   : > { %v3230_v48 = vld [vmem:[#allocation3 + $0x138] sm:$0xff]   ;;  %v1549_v50 = vld [vmem:[%s3756_s10 + $0x260] sm:$0xff]  ;;  %v1474_v52 = vld [vmem:[%s3756_s10 + $0x8] sm:$0xff] }
  0x9c   : > { %v1544_v49 = vld [vmem:[%s3756_s10 + $0x238] sm:$0xff]  ;;  %v1479_v53 = vld [vmem:[%s3756_s10 + $0x30] sm:$0xff] }
  0x9d   : > { %2836 = vmatpush3.bf16.msra.mxu0 %v3187_v5  ;;  %v1709_v51 = vpack.c.bf16 %v1549_v50, %v1544_v49  ;;  %v1674_v54 = vpack.c.bf16 %v1479_v53, %v1474_v52  ;;  %v3768_v56 = vld [vmem:[#allocation8] ss:$0 sm:$0xff] }
  0x9e   : > { %2837 = vmatprep.subr.bf16.mxu0 %v3188_v6 }
  0x9f   : > { %1861 = vmatprep.mubr.bf16.mxu1 %v1709_v51 }
  0xa1   : > { %2838 = vmatpush3.bf16.msra.mxu0 %v3188_v6 }
  0xa2   : > { %2839 = vmatprep.subr.bf16.mxu0 %v3189_v7 }
  0xa5   : > { %2840 = vmatpush3.bf16.msra.mxu0 %v3189_v7 }
  0xa6   : > { %2841 = vmatprep.subr.bf16.mxu0 %v3190_v8 }
  0xa9   : > { %2842 = vmatpush3.bf16.msra.mxu0 %v3190_v8 }
  0xaa   : > { %1773 = vmatprep.subr.bf16.mxu0 %v3525_v33 }
  0xac   : > { %2844 = vmatmul.mubr.bf16.vlgmr.msra.gmra.mrb[0].mxu0 %v3192_v9 }
  0xad   : > { %2847 = vmatprep.mubr.bf16.mxu0 %v3193_v10 }
  0xb4   : > { %2848 = vmatmul.mubr.bf16.gmra.mrb[4].mxu0 %v3194_v11 }
  0xb5   : > { %2851 = vmatprep.mubr.bf16.mxu0 %v3195_v12 }
  0xbc   : > { %2852 = vmatmul.mubr.bf16.gmra.mrb[8].mxu0 %v3196_v13 }
  0xbd   : > { %2855 = vmatprep.mubr.bf16.mxu0 %v3197_v14 }
  0xc4   : > { %2856 = vmatmul.mubr.bf16.gmra.mrb[12].mxu0 %v3198_v15 }
  0xc5   : > { %2859 = vmatprep.mubr.bf16.mxu0 %v3199_v16 }
  0xcc   : > { %2860 = vmatmul.mubr.bf16.gmra.mrb[16].mxu0 %v3200_v17 }
  0xcd   : > { %2863 = vmatprep.mubr.bf16.mxu0 %v3201_v18 }
  0xd4   : > { %2864 = vmatmul.mubr.bf16.gmra.mrb[20].mxu0 %v3202_v19 }
  0xd5   : > { %2867 = vmatprep.mubr.bf16.mxu0 %v3203_v20 }
  0xdc   : > { %2868 = vmatmul.mubr.bf16.gmra.mrb[24].mxu0 %v3204_v21 }
  0xdd   : > { %2871 = vmatprep.mubr.bf16.mxu0 %v3205_v22 }
  0xe4   : > { %2872 = vmatmul.mubr.bf16.gmra.mrb[28].mxu0 %v3206_v23 }
  0xe5   : > { %2875 = vmatprep.mubr.bf16.mxu0 %v3207_v24 }
  0xec   : > { %2876 = vmatmul.mubr.bf16.gmra.mrb[32].mxu0 %v3208_v25 }
  0xed   : > { %2879 = vmatprep.mubr.bf16.mxu0 %v3209_v26 }
  0xf4   : > { %2880 = vmatmul.mubr.bf16.gmra.mrb[36].mxu0 %v3210_v27 }
  0xf5   : > { %2883 = vmatprep.mubr.bf16.mxu0 %v3211_v28 }
  0xfc   : > { %2884 = vmatmul.mubr.bf16.gmra.mrb[40].mxu0 %v3212_v29 }
  0xfd   : > { %2887 = vmatprep.mubr.bf16.mxu0 %v3213_v30 }
 0x104   : > { %2888 = vmatmul.mubr.bf16.gmra.mrb[44].mxu0 %v3214_v31 }
 0x105   : > { %2891 = vmatprep.mubr.bf16.mxu0 %v3215_v32 }
 0x10c   : > { %2892 = vmatmul.mubr.bf16.gmra.mrb[48].mxu0 %v3216_v34 }
 0x10d   : > { %2895 = vmatprep.mubr.bf16.mxu0 %v3217_v35 }
 0x114   : > { %2896 = vmatmul.mubr.bf16.gmra.mrb[52].mxu0 %v3218_v36 }
 0x115   : > { %2899 = vmatprep.mubr.bf16.mxu0 %v3219_v37 }
 0x11c   : > { %2900 = vmatmul.mubr.bf16.gmra.mrb[56].mxu0 %v3220_v38 }
 0x11d   : > { %2903 = vmatprep.mubr.bf16.mxu0 %v3221_v39 }
 0x124   : > { %2904 = vmatmul.mubr.bf16.gmra.mrb[60].mxu0 %v3222_v40 }
 0x125   : > { %2907 = vmatprep.mubr.bf16.mxu0 %v3223_v41 }
 0x12c   : > { %2908 = vmatmul.mubr.bf16.gmra.mrb[64].mxu0 %v3224_v42 }
 0x12d   : > { %2911 = vmatprep.mubr.bf16.mxu0 %v3225_v43 }
 0x134   : > { %2912 = vmatmul.mubr.bf16.gmra.mrb[68].mxu0 %v3226_v44 }
 0x135   : > { %2915 = vmatprep.mubr.bf16.mxu0 %v3227_v45 }
 0x13c   : > { %2916 = vmatmul.mubr.bf16.gmra.mrb[72].mxu0 %v3228_v46 }
 0x13d   : > { %2919 = vmatprep.mubr.bf16.mxu0 %v3229_v47 }
 0x144   : > { %2920 = vmatmul.mubr.bf16.gmra.mrb[76].mxu0 %v3230_v48 }
 0x145   : > { %1805 = vmatprep.mubr.bf16.mxu0 %v1674_v54 }
 0x17f   : > { %v2845_v55 = vpop.f32.mrb[0].mxu0 }
 0x180   : > { %v708_v57 = vpop.f32.mrb[1].mxu0  ;;  %v717_v59 = vadd.f32 %v2845_v55, %v3768_v56 }
 0x181   : > { %v2846_v58 = vpop.f32.mrb[2].mxu0  ;;  %v709_v62 = vadd.f32 %v3768_v56, %v708_v57 }
 0x182   : > { %v720_v60 = vadd.f32 %v2846_v58, %v3768_v56  ;;  %v711_v61 = vpop.f32.mrb[3].mxu0 }
 0x183   : > { %v712_v63 = vadd.f32 %v3768_v56, %v711_v61 }
 0x184   : > { %v1269_v0 = vpack.c.bf16 %v720_v60, %v717_v59 }
 0x185   : > { %v1268_v1 = vpack.c.bf16 %v712_v63, %v709_v62 }
 0x187   : > { %v2849_v2 = vpop.f32.mrb[4].mxu0  ;;  %1774 = vmatpush1.bf16.msra.mxu0 %v1268_v1  ;;  %2995 = vmatpush1.bf16.msra.mxu1 %v1268_v1 }
 0x188   : > { %v724_v3 = vpop.f32.mrb[5].mxu0  ;;  %1775 = vmatprep.subr.bf16.mxu0 %v3525_v33  ;;  %2980 = vmatprep.subr.bf16.mxu1 %v3525_v33  ;;  %v733_v5 = vadd.f32 %v2849_v2, %v3768_v56 }
 0x189   : > { %v2850_v4 = vpop.f32.mrb[6].mxu0  ;;  %v725_v8 = vadd.f32 %v3768_v56, %v724_v3 }
 0x18a   : > { %v736_v6 = vadd.f32 %v2850_v4, %v3768_v56  ;;  %v727_v7 = vpop.f32.mrb[7].mxu0 }
 0x18b   : > { %v728_v9 = vadd.f32 %v3768_v56, %v727_v7  ;;  %1776 = vmatpush1.bf16.msra.mxu0 %v1269_v0  ;;  %2996 = vmatpush1.bf16.msra.mxu1 %v1269_v0 }
 0x18c   : > { %v1271_v10 = vpack.c.bf16 %v736_v6, %v733_v5  ;;  %1777 = vmatprep.subr.bf16.mxu0 %v3525_v33  ;;  %2981 = vmatprep.subr.bf16.mxu1 %v3525_v33 }
 0x18d   : > { %v1270_v11 = vpack.c.bf16 %v728_v9, %v725_v8 }
 0x18f   : > { %v2853_v12 = vpop.f32.mrb[8].mxu0  ;;  %1778 = vmatpush1.bf16.msra.mxu0 %v1270_v11  ;;  %2997 = vmatpush1.bf16.msra.mxu1 %v1270_v11 }
 0x190   : > { %v740_v13 = vpop.f32.mrb[9].mxu0  ;;  %1779 = vmatprep.subr.bf16.mxu0 %v3525_v33  ;;  %2982 = vmatprep.subr.bf16.mxu1 %v3525_v33  ;;  %v749_v15 = vadd.f32 %v2853_v12, %v3768_v56  ;;  %v1548_v12 = vld [vmem:[%s3756_s10 + $0x258] sm:$0xff] }
 0x191   : > { %v2854_v14 = vpop.f32.mrb[10].mxu0  ;;  %v741_v18 = vadd.f32 %v3768_v56, %v740_v13  ;;  %v1473_v13 = vld [vmem:[%s3756_s10] sm:$0xff] }
 0x192   : > { %v752_v16 = vadd.f32 %v2854_v14, %v3768_v56  ;;  %v743_v17 = vpop.f32.mrb[11].mxu0  ;;  %v1478_v14 = vld [vmem:[%s3756_s10 + $0x28] sm:$0xff] }
 0x193   : > { %v744_v19 = vadd.f32 %v3768_v56, %v743_v17  ;;  %1780 = vmatpush1.bf16.msra.mxu0 %v1271_v10  ;;  %2998 = vmatpush1.bf16.msra.mxu1 %v1271_v10  ;;  %v1543_v10 = vld [vmem:[%s3756_s10 + $0x230] sm:$0xff]  ;;  %v1554_v17 = vld [vmem:[%s3756_s10 + $0x288] sm:$0xff] }
 0x194   : > { %v1273_v20 = vpack.c.bf16 %v752_v16, %v749_v15  ;;  %1781 = vmatprep.subr.bf16.mxu0 %v3525_v33  ;;  %2983 = vmatprep.subr.bf16.mxu1 %v3525_v33 }
 0x195   : > { %v1272_v21 = vpack.c.bf16 %v744_v19, %v741_v18  ;;  %v1559_v18 = vld [vmem:[%s3756_s10 + $0x2b0] sm:$0xff] }
 0x197   : > { %v2857_v22 = vpop.f32.mrb[12].mxu0  ;;  %1782 = vmatpush1.bf16.msra.mxu0 %v1272_v21  ;;  %2999 = vmatpush1.bf16.msra.mxu1 %v1272_v21  ;;  %v1484_v21 = vld [vmem:[%s3756_s10 + $0x58] sm:$0xff] }
 0x198   : > { %v756_v23 = vpop.f32.mrb[13].mxu0  ;;  %1783 = vmatprep.subr.bf16.mxu0 %v3525_v33  ;;  %2984 = vmatprep.subr.bf16.mxu1 %v3525_v33  ;;  %v765_v25 = vadd.f32 %v2857_v22, %v3768_v56  ;;  %v1489_v22 = vld [vmem:[%s3756_s10 + $0x80] sm:$0xff] }
 0x199   : > { %v2858_v24 = vpop.f32.mrb[14].mxu0  ;;  %v757_v28 = vadd.f32 %v3768_v56, %v756_v23 }
 0x19a   : > { %v768_v26 = vadd.f32 %v2858_v24, %v3768_v56  ;;  %v759_v27 = vpop.f32.mrb[15].mxu0 }
 0x19b   : > { %v760_v29 = vadd.f32 %v3768_v56, %v759_v27  ;;  %1784 = vmatpush1.bf16.msra.mxu0 %v1273_v20  ;;  %3000 = vmatpush1.bf16.msra.mxu1 %v1273_v20 }
 0x19c   : > { %v1275_v30 = vpack.c.bf16 %v768_v26, %v765_v25  ;;  %1785 = vmatprep.subr.bf16.mxu0 %v3525_v33  ;;  %2985 = vmatprep.subr.bf16.mxu1 %v3525_v33  ;;  %v1708_v25 = vpack.c.bf16 %v1548_v12, %v1543_v10  ;;  %v1673_v26 = vpack.c.bf16 %v1478_v14, %v1473_v13  ;;  %v1573_v14 = vld [vmem:[%s3756_s10 + $0x320] sm:$0xff] }
 0x19d   : > { %v1274_v31 = vpack.c.bf16 %v760_v29, %v757_v28  ;;  %v1714_v28 = vpack.c.bf16 %v1559_v18, %v1554_v17  ;;  %v1503_v17 = vld [vmem:[%s3756_s10 + $0xf0] sm:$0xff]  ;;  %v1508_v18 = vld [vmem:[%s3756_s10 + $0x118] sm:$0xff] }
 0x19f   : > { %v2861_v32 = vpop.f32.mrb[16].mxu0  ;;  %1786 = vmatpush1.bf16.msra.mxu0 %v1274_v31  ;;  %3001 = vmatpush1.bf16.msra.mxu1 %v1274_v31 }
 0x1a0   : > { %v772_v34 = vpop.f32.mrb[17].mxu0  ;;  %1787 = vmatprep.subr.bf16.mxu0 %v3525_v33  ;;  %2986 = vmatprep.subr.bf16.mxu1 %v3525_v33  ;;  %v781_v36 = vadd.f32 %v2861_v32, %v3768_v56  ;;  %v1553_v32 = vld [vmem:[%s3756_s10 + $0x280] sm:$0xff] }
 0x1a1   : > { %v2862_v35 = vpop.f32.mrb[18].mxu0  ;;  %v773_v39 = vadd.f32 %v3768_v56, %v772_v34 }
 0x1a2   : > { %v784_v37 = vadd.f32 %v2862_v35, %v3768_v56  ;;  %v775_v38 = vpop.f32.mrb[19].mxu0  ;;  %v1558_v35 = vld [vmem:[%s3756_s10 + $0x2a8] sm:$0xff] }
 0x1a3   : > { %v776_v40 = vadd.f32 %v3768_v56, %v775_v38  ;;  %1788 = vmatpush1.bf16.msra.mxu0 %v1275_v30  ;;  %3002 = vmatpush1.bf16.msra.mxu1 %v1275_v30  ;;  %v1679_v30 = vpack.c.bf16 %v1489_v22, %v1484_v21  ;;  %v1584_v21 = vld [vmem:[%s3756_s10 + $0x378] sm:$0xff]  ;;  %v1589_v22 = vld [vmem:[%s3756_s10 + $0x3a0] sm:$0xff] }
 0x1a4   : > { %v1277_v41 = vpack.c.bf16 %v784_v37, %v781_v36  ;;  %1789 = vmatprep.subr.bf16.mxu0 %v3525_v33  ;;  %2987 = vmatprep.subr.bf16.mxu1 %v3525_v33  ;;  %v1483_v36 = vld [vmem:[%s3756_s10 + $0x50] sm:$0xff]  ;;  %v1488_v37 = vld [vmem:[%s3756_s10 + $0x78] sm:$0xff] }
 0x1a5   : > { %v1276_v42 = vpack.c.bf16 %v776_v40, %v773_v39  ;;  %v1564_v40 = vld [vmem:[%s3756_s10 + $0x2d8] sm:$0xff] }
 0x1a7   : > { %v2865_v43 = vpop.f32.mrb[20].mxu0  ;;  %1790 = vmatpush1.bf16.msra.mxu0 %v1276_v42  ;;  %3003 = vmatpush1.bf16.msra.mxu1 %v1276_v42 }
 0x1a8   : > { %v788_v44 = vpop.f32.mrb[21].mxu0  ;;  %1791 = vmatprep.subr.bf16.mxu0 %v3525_v33  ;;  %2988 = vmatprep.subr.bf16.mxu1 %v3525_v33  ;;  %v797_v46 = vadd.f32 %v2865_v43, %v3768_v56 }
 0x1a9   : > { %v2866_v45 = vpop.f32.mrb[22].mxu0  ;;  %v789_v49 = vadd.f32 %v3768_v56, %v788_v44  ;;  %v1494_v44 = vld [vmem:[%s3756_s10 + $0xa8] sm:$0xff] }
 0x1aa   : > { %v800_v47 = vadd.f32 %v2866_v45, %v3768_v56  ;;  %v791_v48 = vpop.f32.mrb[23].mxu0  ;;  %v1499_v45 = vld [vmem:[%s3756_s10 + $0xd0] sm:$0xff] }
 0x1ab   : > { %v792_v50 = vadd.f32 %v3768_v56, %v791_v48  ;;  %1792 = vmatpush1.bf16.msra.mxu0 %v1277_v41  ;;  %3004 = vmatpush1.bf16.msra.mxu1 %v1277_v41  ;;  %v1569_v41 = vld [vmem:[%s3756_s10 + $0x300] sm:$0xff]  ;;  %v1713_v48 = vpack.c.bf16 %v1558_v35, %v1553_v32  ;;  %v1729_v32 = vpack.c.bf16 %v1589_v22, %v1584_v21  ;;  %v1538_v22 = vld [vmem:[%s3756_s10 + $0x208] sm:$0xff] }
 0x1ac   : > { %v1279_v51 = vpack.c.bf16 %v800_v47, %v797_v46  ;;  %1793 = vmatprep.subr.bf16.mxu0 %v3525_v33  ;;  %2989 = vmatprep.subr.bf16.mxu1 %v3525_v33  ;;  %v1533_v21 = vld [vmem:[%s3756_s10 + $0x1e0] sm:$0xff] }
 0x1ad   : > { %v1278_v52 = vpack.c.bf16 %v792_v50, %v789_v49  ;;  %v1678_v49 = vpack.c.bf16 %v1488_v37, %v1483_v36  ;;  %v1583_v37 = vld [vmem:[%s3756_s10 + $0x370] sm:$0xff] }
 0x1af   : > { %v2869_v53 = vpop.f32.mrb[24].mxu0  ;;  %1794 = vmatpush1.bf16.msra.mxu0 %v1278_v52  ;;  %3005 = vmatpush1.bf16.msra.mxu1 %v1278_v52 }
 0x1b0   : > { %v804_v54 = vpop.f32.mrb[25].mxu0  ;;  %1795 = vmatprep.subr.bf16.mxu0 %v3525_v33  ;;  %2990 = vmatprep.subr.bf16.mxu1 %v3525_v33  ;;  %v813_v57 = vadd.f32 %v2869_v53, %v3768_v56  ;;  %v1684_v53 = vpack.c.bf16 %v1499_v45, %v1494_v44  ;;  %v1594_v44 = vld [vmem:[%s3756_s10 + $0x3c8] sm:$0xff]  ;;  %v1599_v45 = vld [vmem:[%s3756_s10 + $0x3f0] sm:$0xff] }
 0x1b1   : > { %v2870_v55 = vpop.f32.mrb[26].mxu0  ;;  %v805_v60 = vadd.f32 %v3768_v56, %v804_v54 }
 0x1b2   : > { %v816_v58 = vadd.f32 %v2870_v55, %v3768_v56  ;;  %v807_v59 = vpop.f32.mrb[27].mxu0  ;;  %v1563_v55 = vld [vmem:[%s3756_s10 + $0x2d0] sm:$0xff] }
 0x1b3   : > { %v808_v61 = vadd.f32 %v3768_v56, %v807_v59  ;;  %1796 = vmatpush1.bf16.msra.mxu0 %v1279_v51  ;;  %3006 = vmatpush1.bf16.msra.mxu1 %v1279_v51  ;;  %v1719_v51 = vpack.c.bf16 %v1569_v41, %v1564_v40  ;;  %v1493_v59 = vld [vmem:[%s3756_s10 + $0xa0] sm:$0xff]  ;;  %v1518_v41 = vld [vmem:[%s3756_s10 + $0x168] sm:$0xff] }
 0x1b4   : > { %v1281_v62 = vpack.c.bf16 %v816_v58, %v813_v57  ;;  %1797 = vmatprep.subr.bf16.mxu0 %v3525_v33  ;;  %2991 = vmatprep.subr.bf16.mxu1 %v3525_v33  ;;  %v1568_v58 = vld [vmem:[%s3756_s10 + $0x2f8] sm:$0xff]  ;;  %v1513_v40 = vld [vmem:[%s3756_s10 + $0x140] sm:$0xff] }
 0x1b5   : > { %v1280_v63 = vpack.c.bf16 %v808_v61, %v805_v60  ;;  %v1498_v60 = vld [vmem:[%s3756_s10 + $0xc8] sm:$0xff] }
 0x1b7   : > { %v2873_v0 = vpop.f32.mrb[28].mxu0  ;;  %1798 = vmatpush1.bf16.msra.mxu0 %v1280_v63  ;;  %3007 = vmatpush1.bf16.msra.mxu1 %v1280_v63  ;;  %v1574_v63 = vld [vmem:[%s3756_s10 + $0x328] sm:$0xff] }
 0x1b8   : > { %v820_v1 = vpop.f32.mrb[29].mxu0  ;;  %1799 = vmatprep.subr.bf16.mxu0 %v3525_v33  ;;  %2992 = vmatprep.subr.bf16.mxu1 %v3525_v33  ;;  %v829_v3 = vadd.f32 %v2873_v0, %v3768_v56  ;;  %v1579_v0 = vld [vmem:[%s3756_s10 + $0x350] sm:$0xff] }
 0x1b9   : > { %v2874_v2 = vpop.f32.mrb[30].mxu0  ;;  %v821_v6 = vadd.f32 %v3768_v56, %v820_v1  ;;  %v1724_v10 = vpack.c.bf16 %v1579_v0, %v1574_v63  ;;  %v1523_v63 = vld [vmem:[%s3756_s10 + $0x190] sm:$0xff]  ;;  %v1528_v0 = vld [vmem:[%s3756_s10 + $0x1b8] sm:$0xff] }
 0x1ba   : > { %v832_v4 = vadd.f32 %v2874_v2, %v3768_v56  ;;  %v823_v5 = vpop.f32.mrb[31].mxu0 }
 0x1bb   : > { %v824_v7 = vadd.f32 %v3768_v56, %v823_v5  ;;  %1800 = vmatpush1.bf16.msra.mxu0 %v1281_v62  ;;  %3008 = vmatpush1.bf16.msra.mxu1 %v1281_v62 }
 0x1bc   : > { %v1283_v8 = vpack.c.bf16 %v832_v4, %v829_v3  ;;  %1801 = vmatprep.subr.bf16.mxu0 %v3525_v33  ;;  %2993 = vmatprep.subr.bf16.mxu1 %v3525_v33  ;;  %v1504_v3 = vld [vmem:[%s3756_s10 + $0xf8] sm:$0xff]  ;;  %v1509_v4 = vld [vmem:[%s3756_s10 + $0x120] sm:$0xff] }
 0x1bd   : > { %v1282_v9 = vpack.c.bf16 %v824_v7, %v821_v6  ;;  %v1718_v7 = vpack.c.bf16 %v1568_v58, %v1563_v55  ;;  %v1689_v12 = vpack.c.bf16 %v1509_v4, %v1504_v3 }
 0x1bf   : > { %v2877_v11 = vpop.f32.mrb[32].mxu0  ;;  %1802 = vmatpush1.bf16.msra.mxu0 %v1282_v9  ;;  %3009 = vmatpush1.bf16.msra.mxu1 %v1282_v9 }
 0x1c0   : > { %v845_v15 = vadd.f32 %v2877_v11, %v3768_v56  ;;  %v836_v16 = vpop.f32.mrb[33].mxu0  ;;  %1803 = vmatprep.subr.bf16.mxu0 %v3525_v33  ;;  %2994 = vmatprep.subr.bf16.mxu1 %v3525_v33 }
 0x1c1   : > { %v837_v19 = vadd.f32 %v3768_v56, %v836_v16  ;;  %v2878_v20 = vpop.f32.mrb[34].mxu0 }
 0x1c2   : > { %v848_v23 = vadd.f32 %v2878_v20, %v3768_v56  ;;  %v839_v24 = vpop.f32.mrb[35].mxu0 }
 0x1c3   : > { %v840_v27 = vadd.f32 %v3768_v56, %v839_v24  ;;  %1804 = vmatpush1.bf16.msra.mxu0 %v1283_v8  ;;  %3010 = vmatpush1.bf16.msra.mxu1 %v1283_v8  ;;  %v1683_v8 = vpack.c.bf16 %v1498_v60, %v1493_v59  ;;  %v1593_v60 = vld [vmem:[%s3756_s10 + $0x3c0] sm:$0xff] }
 0x1c4   : > { %v1285_v29 = vpack.c.bf16 %v848_v23, %v845_v15  ;;  %1966 = vmatprep.subr.bf16.mxu1 %v3525_v33  ;;  %v1578_v15 = vld [vmem:[%s3756_s10 + $0x348] sm:$0xff] }
 0x1c5   : > { %v1284_v31 = vpack.c.bf16 %v840_v27, %v837_v19  ;;  %v1723_v27 = vpack.c.bf16 %v1578_v15, %v1573_v14 }
 0x1c6   : > { %1862 = vmatmul.mubr.bf16.vlgmr.msra.gmra.mrb[0].mxu1 %v1708_v25  ;;  %1806 = vmatmul.mubr.bf16.vlgmr.msra.gmra.mrb[80].mxu0 %v1673_v26  ;;  %v1514_v25 = vld [vmem:[%s3756_s10 + $0x148] sm:$0xff]  ;;  %v1519_v26 = vld [vmem:[%s3756_s10 + $0x170] sm:$0xff] }
 0x1c7   : > { %v2881_v34 = vpop.f32.mrb[36].mxu0  ;;  %1967 = vmatpush1.bf16.msra.mxu1 %v1284_v31  ;;  %1869 = vmatprep.mubr.bf16.mxu1 %v1714_v28  ;;  %v1694_v35 = vpack.c.bf16 %v1519_v26, %v1514_v25 }
 0x1c8   : > { %v861_v38 = vadd.f32 %v2881_v34, %v3768_v56  ;;  %v852_v39 = vpop.f32.mrb[37].mxu0  ;;  %1968 = vmatprep.subr.bf16.mxu1 %v3525_v33  ;;  %1813 = vmatprep.mubr.bf16.mxu0 %v1679_v30  ;;  %v1688_v30 = vpack.c.bf16 %v1508_v18, %v1503_v17  ;;  %v1603_v18 = vld [vmem:[%s3756_s10 + $0x410] sm:$0xff] }
 0x1c9   : > { %v853_v42 = vadd.f32 %v3768_v56, %v852_v39  ;;  %v2882_v43 = vpop.f32.mrb[38].mxu0 }
 0x1ca   : > { %v864_v46 = vadd.f32 %v2882_v43, %v3768_v56  ;;  %v855_v47 = vpop.f32.mrb[39].mxu0 }
 0x1cb   : > { %v856_v50 = vadd.f32 %v3768_v56, %v855_v47  ;;  %1969 = vmatpush1.bf16.msra.mxu1 %v1285_v29 }
 0x1cc   : > { %v1287_v52 = vpack.c.bf16 %v864_v46, %v861_v38  ;;  %1970 = vmatprep.subr.bf16.mxu1 %v3525_v33  ;;  %v1588_v38 = vld [vmem:[%s3756_s10 + $0x398] sm:$0xff] }
 0x1cd   : > { %v1286_v54 = vpack.c.bf16 %v856_v50, %v853_v42  ;;  %v1728_v50 = vpack.c.bf16 %v1588_v38, %v1583_v37 }
 0x1ce   : > { %1870 = vmatmul.mubr.bf16.gmra.mrb[4].mxu1 %v1713_v48  ;;  %1814 = vmatmul.mubr.bf16.gmra.mrb[84].mxu0 %v1678_v49  ;;  %v1524_v48 = vld [vmem:[%s3756_s10 + $0x198] sm:$0xff]  ;;  %v1529_v49 = vld [vmem:[%s3756_s10 + $0x1c0] sm:$0xff] }
 0x1cf   : > { %1971 = vmatpush1.bf16.msra.mxu1 %v1286_v54  ;;  %v2885_v57 = vpop.f32.mrb[40].mxu0  ;;  %1877 = vmatprep.mubr.bf16.mxu1 %v1719_v51  ;;  %v1734_v54 = vpack.c.bf16 %v1599_v45, %v1594_v44  ;;  %v1699_v58 = vpack.c.bf16 %v1529_v49, %v1524_v48 }
 0x1d0   : > { %v877_v61 = vadd.f32 %v2885_v57, %v3768_v56  ;;  %1972 = vmatprep.subr.bf16.mxu1 %v3525_v33  ;;  %v868_v62 = vpop.f32.mrb[41].mxu0  ;;  %1821 = vmatprep.mubr.bf16.mxu0 %v1684_v53  ;;  %v1693_v53 = vpack.c.bf16 %v1518_v41, %v1513_v40  ;;  %v1613_v41 = vld [vmem:[%s3756_s10 + $0x460] sm:$0xff] }
 0x1d1   : > { %v869_v1 = vadd.f32 %v3768_v56, %v868_v62  ;;  %v2886_v2 = vpop.f32.mrb[42].mxu0 }
 0x1d2   : > { %v880_v5 = vadd.f32 %v2886_v2, %v3768_v56  ;;  %v871_v6 = vpop.f32.mrb[43].mxu0  ;;  %v1609_v2 = vld [vmem:[%s3756_s10 + $0x440] sm:$0xff] }
 0x1d3   : > { %1973 = vmatpush1.bf16.msra.mxu1 %v1287_v52  ;;  %v872_v9 = vadd.f32 %v3768_v56, %v871_v6 }
 0x1d4   : > { %v1289_v11 = vpack.c.bf16 %v880_v5, %v877_v61  ;;  %1974 = vmatprep.subr.bf16.mxu1 %v3525_v33  ;;  %v1598_v61 = vld [vmem:[%s3756_s10 + $0x3e8] sm:$0xff] }
 0x1d5   : > { %v1288_v13 = vpack.c.bf16 %v872_v9, %v869_v1  ;;  %v1604_v1 = vld [vmem:[%s3756_s10 + $0x418] sm:$0xff]  ;;  %v1733_v9 = vpack.c.bf16 %v1598_v61, %v1593_v60 }
 0x1d6   : > { %1878 = vmatmul.mubr.bf16.gmra.mrb[8].mxu1 %v1718_v7  ;;  %1822 = vmatmul.mubr.bf16.gmra.mrb[88].mxu0 %v1683_v8  ;;  %v1534_v7 = vld [vmem:[%s3756_s10 + $0x1e8] sm:$0xff]  ;;  %v1539_v8 = vld [vmem:[%s3756_s10 + $0x210] sm:$0xff] }
 0x1d7   : > { %1975 = vmatpush1.bf16.msra.mxu1 %v1288_v13  ;;  %1885 = vmatprep.mubr.bf16.mxu1 %v1724_v10  ;;  %v2889_v16 = vpop.f32.mrb[44].mxu0  ;;  %v1739_v13 = vpack.c.bf16 %v1609_v2, %v1604_v1 }
 0x1d8   : > { %1976 = vmatprep.subr.bf16.mxu1 %v3525_v33  ;;  %v893_v19 = vadd.f32 %v2889_v16, %v3768_v56  ;;  %v884_v20 = vpop.f32.mrb[45].mxu0  ;;  %1829 = vmatprep.mubr.bf16.mxu0 %v1689_v12  ;;  %v1698_v12 = vpack.c.bf16 %v1528_v0, %v1523_v63  ;;  %v1704_v16 = vpack.c.bf16 %v1539_v8, %v1534_v7  ;;  %v1634_v63 = vld [vmem:[%s3756_s10 + $0x508] sm:$0xff]  ;;  %v1639_v0 = vld [vmem:[%s3756_s10 + $0x530] sm:$0xff] }
 0x1d9   : > { %v885_v23 = vadd.f32 %v3768_v56, %v884_v20  ;;  %v2890_v24 = vpop.f32.mrb[46].mxu0  ;;  %v1754_v7 = vpack.c.bf16 %v1639_v0, %v1634_v63  ;;  %v1487_v63 = vld [vmem:[%s3756_s10 + $0x70] sm:$0xff]  ;;  %v1497_v0 = vld [vmem:[%s3756_s10 + $0xc0] sm:$0xff] }
 0x1da   : > { %v896_v28 = vadd.f32 %v2890_v24, %v3768_v56  ;;  %v887_v29 = vpop.f32.mrb[47].mxu0  ;;  %v1619_v24 = vld [vmem:[%s3756_s10 + $0x490] sm:$0xff] }
 0x1db   : > { %1977 = vmatpush1.bf16.msra.mxu1 %v1289_v11  ;;  %v888_v31 = vadd.f32 %v3768_v56, %v887_v29  ;;  %v1477_v29 = vld [vmem:[%s3756_s10 + $0x20] sm:$0xff] }
 0x1dc   : > { %v1291_v34 = vpack.c.bf16 %v896_v28, %v893_v19  ;;  %1978 = vmatprep.subr.bf16.mxu1 %v3525_v33  ;;  %v1608_v19 = vld [vmem:[%s3756_s10 + $0x438] sm:$0xff] }
 0x1dd   : > { %v1290_v36 = vpack.c.bf16 %v888_v31, %v885_v23  ;;  %v1614_v23 = vld [vmem:[%s3756_s10 + $0x468] sm:$0xff]  ;;  %v1738_v31 = vpack.c.bf16 %v1608_v19, %v1603_v18 }
 0x1de   : > { %1886 = vmatmul.mubr.bf16.gmra.mrb[12].mxu1 %v1723_v27  ;;  %1830 = vmatmul.mubr.bf16.gmra.mrb[92].mxu0 %v1688_v30  ;;  %v1482_v30 = vld [vmem:[%s3756_s10 + $0x48] sm:$0xff] }
 0x1df   : > { %1893 = vmatprep.mubr.bf16.mxu1 %v1729_v32  ;;  %1979 = vmatpush1.bf16.msra.mxu1 %v1290_v36  ;;  %v2893_v39 = vpop.f32.mrb[48].mxu0  ;;  %v1744_v36 = vpack.c.bf16 %v1619_v24, %v1614_v23 }
 0x1e0   : > { %1980 = vmatprep.subr.bf16.mxu1 %v3525_v33  ;;  %v909_v42 = vadd.f32 %v2893_v39, %v3768_v56  ;;  %v900_v43 = vpop.f32.mrb[49].mxu0  ;;  %1837 = vmatprep.mubr.bf16.mxu0 %v1694_v35  ;;  %v1703_v35 = vpack.c.bf16 %v1538_v22, %v1533_v21  ;;  %v1677_v39 = vpack.c.bf16 %v1482_v30, %v1477_v29  ;;  %v1654_v30 = vld [vmem:[%s3756_s10 + $0x5a8] sm:$0xff] }
 0x1e1   : > { %v901_v46 = vadd.f32 %v3768_v56, %v900_v43  ;;  %v2894_v47 = vpop.f32.mrb[50].mxu0 }
 0x1e2   : > { %v912_v51 = vadd.f32 %v2894_v47, %v3768_v56  ;;  %v903_v52 = vpop.f32.mrb[51].mxu0  ;;  %v1629_v47 = vld [vmem:[%s3756_s10 + $0x4e0] sm:$0xff] }
 0x1e3   : > { %1981 = vmatpush1.bf16.msra.mxu1 %v1291_v34  ;;  %v904_v55 = vadd.f32 %v3768_v56, %v903_v52 }
 0x1e4   : > { %v1293_v57 = vpack.c.bf16 %v912_v51, %v909_v42  ;;  %1982 = vmatprep.subr.bf16.mxu1 %v3525_v33  ;;  %v1618_v42 = vld [vmem:[%s3756_s10 + $0x488] sm:$0xff] }
 0x1e5   : > { %v1292_v59 = vpack.c.bf16 %v904_v55, %v901_v46  ;;  %v1624_v46 = vld [vmem:[%s3756_s10 + $0x4b8] sm:$0xff] }
 0x1e6   : > { %1894 = vmatmul.mubr.bf16.gmra.mrb[16].mxu1 %v1728_v50  ;;  %1838 = vmatmul.mubr.bf16.gmra.mrb[96].mxu0 %v1693_v53  ;;  %v1743_v50 = vpack.c.bf16 %v1618_v42, %v1613_v41  ;;  %v1749_v53 = vpack.c.bf16 %v1629_v47, %v1624_v46  ;;  %v1653_v42 = vld [vmem:[%s3756_s10 + $0x5a0] sm:$0xff]  ;;  %v1664_v47 = vld [vmem:[%s3756_s10 + $0x5f8] sm:$0xff] }
 0x1e7   : > { %1901 = vmatprep.mubr.bf16.mxu1 %v1734_v54  ;;  %1983 = vmatpush1.bf16.msra.mxu1 %v1292_v59  ;;  %v2897_v62 = vpop.f32.mrb[52].mxu0  ;;  %v1628_v59 = vld [vmem:[%s3756_s10 + $0x4d8] sm:$0xff] }
 0x1e8   : > { %1984 = vmatprep.subr.bf16.mxu1 %v3525_v33  ;;  %v925_v3 = vadd.f32 %v2897_v62, %v3768_v56  ;;  %v916_v4 = vpop.f32.mrb[53].mxu0  ;;  %1845 = vmatprep.mubr.bf16.mxu0 %v1699_v58  ;;  %v1623_v58 = vld [vmem:[%s3756_s10 + $0x4b0] sm:$0xff] }
 0x1e9   : > { %v917_v5 = vadd.f32 %v3768_v56, %v916_v4  ;;  %v2898_v6 = vpop.f32.mrb[54].mxu0 }
 0x1ea   : > { %v928_v10 = vadd.f32 %v2898_v6, %v3768_v56  ;;  %v919_v11 = vpop.f32.mrb[55].mxu0 }
 0x1eb   : > { %1985 = vmatpush1.bf16.msra.mxu1 %v1293_v57  ;;  %v920_v14 = vadd.f32 %v3768_v56, %v919_v11  ;;  %v1638_v11 = vld [vmem:[%s3756_s10 + $0x528] sm:$0xff] }
 0x1ec   : > { %v1295_v15 = vpack.c.bf16 %v928_v10, %v925_v3  ;;  %1986 = vmatprep.subr.bf16.mxu1 %v3525_v33  ;;  %v1748_v3 = vpack.c.bf16 %v1628_v59, %v1623_v58  ;;  %v1633_v10 = vld [vmem:[%s3756_s10 + $0x500] sm:$0xff]  ;;  %v1663_v59 = vld [vmem:[%s3756_s10 + $0x5f0] sm:$0xff] }
 0x1ed   : > { %v1294_v17 = vpack.c.bf16 %v920_v14, %v917_v5  ;;  %v1644_v14 = vld [vmem:[%s3756_s10 + $0x558] sm:$0xff]  ;;  %v1753_v18 = vpack.c.bf16 %v1638_v11, %v1633_v10  ;;  %v1507_v10 = vld [vmem:[%s3756_s10 + $0x110] sm:$0xff] }
 0x1ee   : > { %1902 = vmatmul.mubr.bf16.gmra.mrb[20].mxu1 %v1733_v9  ;;  %1846 = vmatmul.mubr.bf16.gmra.mrb[100].mxu0 %v1698_v12  ;;  %v1512_v11 = vld [vmem:[%s3756_s10 + $0x138] sm:$0xff] }
 0x1ef   : > { %1909 = vmatprep.mubr.bf16.mxu1 %v1739_v13  ;;  %v2901_v20 = vpop.f32.mrb[56].mxu0  ;;  %1987 = vmatpush1.bf16.msra.mxu1 %v1294_v17 }
 0x1f0   : > { %v941_v25 = vadd.f32 %v2901_v20, %v3768_v56  ;;  %v932_v26 = vpop.f32.mrb[57].mxu0  ;;  %1988 = vmatprep.subr.bf16.mxu1 %v3525_v33  ;;  %1853 = vmatprep.mubr.bf16.mxu0 %v1704_v16 }
 0x1f1   : > { %v933_v27 = vadd.f32 %v3768_v56, %v932_v26  ;;  %v2902_v28 = vpop.f32.mrb[58].mxu0  ;;  %v1648_v26 = vld [vmem:[%s3756_s10 + $0x578] sm:$0xff] }
 0x1f2   : > { %v944_v32 = vadd.f32 %v2902_v28, %v3768_v56  ;;  %v935_v34 = vpop.f32.mrb[59].mxu0 }
 0x1f3   : > { %v936_v37 = vadd.f32 %v3768_v56, %v935_v34  ;;  %1989 = vmatpush1.bf16.msra.mxu1 %v1295_v15  ;;  %v1649_v15 = vld [vmem:[%s3756_s10 + $0x580] sm:$0xff] }
 0x1f4   : > { %v1297_v38 = vpack.c.bf16 %v944_v32, %v941_v25  ;;  %1990 = vmatprep.subr.bf16.mxu1 %v3525_v33  ;;  %v1759_v22 = vpack.c.bf16 %v1649_v15, %v1644_v14  ;;  %v1643_v25 = vld [vmem:[%s3756_s10 + $0x550] sm:$0xff]  ;;  %v1692_v15 = vpack.c.bf16 %v1512_v11, %v1507_v10 }
 0x1f5   : > { %v1296_v40 = vpack.c.bf16 %v936_v37, %v933_v27 }
 0x1f6   : > { %1910 = vmatmul.mubr.bf16.gmra.mrb[24].mxu1 %v1738_v31  ;;  %1854 = vmatmul.mubr.bf16.gmra.mrb[104].mxu0 %v1703_v35  ;;  %v1659_v31 = vld [vmem:[%s3756_s10 + $0x5d0] sm:$0xff]  ;;  %v1758_v35 = vpack.c.bf16 %v1648_v26, %v1643_v25 }
 0x1f7   : > { %1917 = vmatprep.mubr.bf16.mxu1 %v1744_v36  ;;  %v2905_v43 = vpop.f32.mrb[60].mxu0  ;;  %1991 = vmatpush1.bf16.msra.mxu1 %v1296_v40 }
 0x1f8   : > { %v957_v44 = vadd.f32 %v2905_v43, %v3768_v56  ;;  %v948_v45 = vpop.f32.mrb[61].mxu0  ;;  %1992 = vmatprep.subr.bf16.mxu1 %v3525_v33  ;;  %2939 = vmatprep.mubr.bf16.mxu0 %v1677_v39  ;;  %v1764_v39 = vpack.c.bf16 %v1659_v31, %v1654_v30  ;;  %v1658_v43 = vld [vmem:[%s3756_s10 + $0x5c8] sm:$0xff]  ;;  %v1500_v30 = vld [vmem:[%s3756_s10 + $0xd8] sm:$0xff] }
 0x1f9   : > { %v949_v48 = vadd.f32 %v3768_v56, %v948_v45  ;;  %v2906_v49 = vpop.f32.mrb[62].mxu0  ;;  %v1506_v31 = vld [vmem:[%s3756_s10 + $0x108] sm:$0xff] }
 0x1fa   : > { %v960_v51 = vadd.f32 %v2906_v49, %v3768_v56  ;;  %v951_v52 = vpop.f32.mrb[63].mxu0 }
 0x1fb   : > { %v952_v54 = vadd.f32 %v3768_v56, %v951_v52  ;;  %1993 = vmatpush1.bf16.msra.mxu1 %v1297_v38 }
 0x1fc   : > { %v1299_v55 = vpack.c.bf16 %v960_v51, %v957_v44  ;;  %1994 = vmatprep.subr.bf16.mxu1 %v3525_v33  ;;  %v1763_v51 = vpack.c.bf16 %v1658_v43, %v1653_v42  ;;  %v1505_v42 = vld [vmem:[%s3756_s10 + $0x100] sm:$0xff]  ;;  %v1510_v43 = vld [vmem:[%s3756_s10 + $0x128] sm:$0xff] }
 0x1fd   : > { %v1298_v57 = vpack.c.bf16 %v952_v54, %v949_v48  ;;  %v1669_v48 = vld [vmem:[%s3756_s10 + $0x620] sm:$0xff] }
 0x1fe   : > { %1918 = vmatmul.mubr.bf16.gmra.mrb[28].mxu1 %v1743_v50 }
 0x1ff   : > { %1925 = vmatprep.mubr.bf16.mxu1 %v1749_v53  ;;  %v2909_v60 = vpop.f32.mrb[64].mxu0  ;;  %1995 = vmatpush1.bf16.msra.mxu1 %v1298_v57 }
 0x200   : > { %v973_v61 = vadd.f32 %v2909_v60, %v3768_v56  ;;  %v964_v62 = vpop.f32.mrb[65].mxu0  ;;  %1996 = vmatprep.subr.bf16.mxu1 %v3525_v33  ;;  %v1668_v60 = vld [vmem:[%s3756_s10 + $0x618] sm:$0xff] }
 0x201   : > { %v965_v1 = vadd.f32 %v3768_v56, %v964_v62  ;;  %v2910_v2 = vpop.f32.mrb[66].mxu0  ;;  %v1481_v62 = vld [vmem:[%s3756_s10 + $0x40] sm:$0xff] }
 0x202   : > { %v976_v4 = vadd.f32 %v2910_v2, %v3768_v56  ;;  %v967_v5 = vpop.f32.mrb[67].mxu0  ;;  %v1768_v2 = vpack.c.bf16 %v1668_v60, %v1663_v59  ;;  %v1587_v59 = vld [vmem:[%s3756_s10 + $0x390] sm:$0xff]  ;;  %v1592_v60 = vld [vmem:[%s3756_s10 + $0x3b8] sm:$0xff] }
 0x203   : > { %v968_v6 = vadd.f32 %v3768_v56, %v967_v5  ;;  %1997 = vmatpush1.bf16.msra.mxu1 %v1299_v55  ;;  %v1769_v55 = vpack.c.bf16 %v1669_v48, %v1664_v47  ;;  %v1572_v47 = vld [vmem:[%s3756_s10 + $0x318] sm:$0xff]  ;;  %v1577_v48 = vld [vmem:[%s3756_s10 + $0x340] sm:$0xff] }
 0x204   : > { %v1301_v8 = vpack.c.bf16 %v976_v4, %v973_v61  ;;  %v1476_v61 = vld [vmem:[%s3756_s10 + $0x18] sm:$0xff] }
 0x205   : > { %v1300_v9 = vpack.c.bf16 %v968_v6, %v965_v1  ;;  %v1502_v1 = vld [vmem:[%s3756_s10 + $0xe8] sm:$0xff]  ;;  %v1475_v6 = vld [vmem:[%s3756_s10 + $0x10] sm:$0xff] }
 0x206   : > { %1926 = vmatmul.mubr.bf16.gmra.mrb[32].mxu1 %v1748_v3  ;;  %v1676_v3 = vpack.c.bf16 %v1481_v62, %v1476_v61  ;;  %v1687_v5 = vpack.c.bf16 %v1502_v1, %v1497_v0  ;;  %v1597_v61 = vld [vmem:[%s3756_s10 + $0x3e0] sm:$0xff]  ;;  %v1602_v62 = vld [vmem:[%s3756_s10 + $0x408] sm:$0xff]  ;;  %v1732_v0 = vpack.c.bf16 %v1592_v60, %v1587_v59 }
 0x207   : > { %1933 = vmatprep.mubr.bf16.mxu1 %v1754_v7  ;;  %v2913_v33 = vpop.f32.mrb[68].mxu0  ;;  %2923 = vmatprep.subr.bf16.mxu0 %v1300_v9  ;;  %v1480_v7 = vld [vmem:[%s3756_s10 + $0x38] sm:$0xff]  ;;  %v1737_v1 = vpack.c.bf16 %v1602_v62, %v1597_v61  ;;  %v1585_v60 = vld [vmem:[%s3756_s10 + $0x380] sm:$0xff]  ;;  %v1590_v61 = vld [vmem:[%s3756_s10 + $0x3a8] sm:$0xff] }
 0x208   : > { %v989_v12 = vadd.f32 %v2913_v33, %v3768_v56  ;;  %v980_v13 = vpop.f32.mrb[69].mxu0  ;;  %2924 = vmatpush3.bf16.msra.mxu0 %v1300_v9  ;;  %v1491_v9 = vld [vmem:[%s3756_s10 + $0x90] sm:$0xff]  ;;  %v1517_v33 = vld [vmem:[%s3756_s10 + $0x160] sm:$0xff]  ;;  %v1596_v62 = vld [vmem:[%s3756_s10 + $0x3d8] sm:$0xff] }
 0x209   : > { %v981_v16 = vadd.f32 %v3768_v56, %v980_v13  ;;  %v2914_v17 = vpop.f32.mrb[70].mxu0  ;;  %2925 = vmatprep.subr.bf16.mxu0 %v1301_v8  ;;  %v1675_v13 = vpack.c.bf16 %v1480_v7, %v1475_v6  ;;  %v1607_v6 = vld [vmem:[%s3756_s10 + $0x430] sm:$0xff]  ;;  %v1612_v7 = vld [vmem:[%s3756_s10 + $0x458] sm:$0xff] }
 0x20a   : > { %v992_v19 = vadd.f32 %v2914_v17, %v3768_v56  ;;  %v983_v20 = vpop.f32.mrb[71].mxu0  ;;  %v1485_v17 = vld [vmem:[%s3756_s10 + $0x60] sm:$0xff] }
 0x20b   : > { %v984_v21 = vadd.f32 %v3768_v56, %v983_v20  ;;  %v1501_v20 = vld [vmem:[%s3756_s10 + $0xe0] sm:$0xff] }
 0x20c   : > { %v1303_v23 = vpack.c.bf16 %v992_v19, %v989_v12  ;;  %2926 = vmatpush3.bf16.msra.mxu0 %v1301_v8  ;;  %v1486_v8 = vld [vmem:[%s3756_s10 + $0x68] sm:$0xff]  ;;  %v1496_v19 = vld [vmem:[%s3756_s10 + $0xb8] sm:$0xff] }
 0x20d   : > { %v1302_v24 = vpack.c.bf16 %v984_v21, %v981_v16  ;;  %v1522_v12 = vld [vmem:[%s3756_s10 + $0x188] sm:$0xff]  ;;  %v1681_v14 = vpack.c.bf16 %v1491_v9, %v1486_v8  ;;  %v1527_v21 = vld [vmem:[%s3756_s10 + $0x1b0] sm:$0xff]  ;;  %v1686_v26 = vpack.c.bf16 %v1501_v20, %v1496_v19  ;;  %v1617_v8 = vld [vmem:[%s3756_s10 + $0x480] sm:$0xff] }
 0x20e   : > { %1934 = vmatmul.mubr.bf16.gmra.mrb[36].mxu1 %v1753_v18  ;;  %v1697_v16 = vpack.c.bf16 %v1522_v12, %v1517_v33  ;;  %v1490_v18 = vld [vmem:[%s3756_s10 + $0x88] sm:$0xff]  ;;  %v1742_v33 = vpack.c.bf16 %v1612_v7, %v1607_v6  ;;  %v1637_v19 = vld [vmem:[%s3756_s10 + $0x520] sm:$0xff] }
 0x20f   : > { %1941 = vmatprep.mubr.bf16.mxu1 %v1759_v22  ;;  %v2917_v27 = vpop.f32.mrb[72].mxu0  ;;  %2927 = vmatprep.subr.bf16.mxu0 %v1302_v24  ;;  %v1532_v22 = vld [vmem:[%s3756_s10 + $0x1d8] sm:$0xff]  ;;  %v1680_v25 = vpack.c.bf16 %v1490_v18, %v1485_v17  ;;  %v1622_v9 = vld [vmem:[%s3756_s10 + $0x4a8] sm:$0xff]  ;;  %v1627_v17 = vld [vmem:[%s3756_s10 + $0x4d0] sm:$0xff] }
 0x210   : > { %v1005_v28 = vadd.f32 %v2917_v27, %v3768_v56  ;;  %v996_v29 = vpop.f32.mrb[73].mxu0  ;;  %2928 = vmatpush3.bf16.msra.mxu0 %v1302_v24  ;;  %v1542_v24 = vld [vmem:[%s3756_s10 + $0x228] sm:$0xff]  ;;  %v1702_v27 = vpack.c.bf16 %v1532_v22, %v1527_v21  ;;  %v1747_v12 = vpack.c.bf16 %v1622_v9, %v1617_v8  ;;  %v1632_v18 = vld [vmem:[%s3756_s10 + $0x4f8] sm:$0xff]  ;;  %v1605_v7 = vld [vmem:[%s3756_s10 + $0x420] sm:$0xff] }
 0x211   : > { %v997_v32 = vadd.f32 %v3768_v56, %v996_v29  ;;  %v2918_v34 = vpop.f32.mrb[74].mxu0  ;;  %2929 = vmatprep.subr.bf16.mxu0 %v1303_v23  ;;  %v1495_v29 = vld [vmem:[%s3756_s10 + $0xb0] sm:$0xff]  ;;  %v1642_v20 = vld [vmem:[%s3756_s10 + $0x548] sm:$0xff]  ;;  %v1616_v9 = vld [vmem:[%s3756_s10 + $0x478] sm:$0xff] }
 0x212   : > { %v1008_v36 = vadd.f32 %v2918_v34, %v3768_v56  ;;  %v999_v37 = vpop.f32.mrb[75].mxu0  ;;  %v1547_v34 = vld [vmem:[%s3756_s10 + $0x250] sm:$0xff]  ;;  %v1610_v8 = vld [vmem:[%s3756_s10 + $0x448] sm:$0xff] }
 0x213   : > { %v1000_v38 = vadd.f32 %v3768_v56, %v999_v37  ;;  %v1562_v37 = vld [vmem:[%s3756_s10 + $0x2c8] sm:$0xff] }
 0x214   : > { %v1305_v40 = vpack.c.bf16 %v1008_v36, %v1005_v28  ;;  %2930 = vmatpush3.bf16.msra.mxu0 %v1303_v23  ;;  %v1537_v23 = vld [vmem:[%s3756_s10 + $0x200] sm:$0xff] }
 0x215   : > { %v1304_v41 = vpack.c.bf16 %v1000_v38, %v997_v32  ;;  %v1707_v28 = vpack.c.bf16 %v1542_v24, %v1537_v23  ;;  %v1511_v32 = vld [vmem:[%s3756_s10 + $0x130] sm:$0xff]  ;;  %v1557_v36 = vld [vmem:[%s3756_s10 + $0x2a0] sm:$0xff]  ;;  %v1685_v38 = vpack.c.bf16 %v1500_v30, %v1495_v29  ;;  %v1752_v23 = vpack.c.bf16 %v1632_v18, %v1627_v17  ;;  %v1652_v30 = vld [vmem:[%s3756_s10 + $0x598] sm:$0xff] }
 0x216   : > { %1942 = vmatmul.mubr.bf16.gmra.mrb[40].mxu1 %v1758_v35  ;;  %v1552_v35 = vld [vmem:[%s3756_s10 + $0x278] sm:$0xff]  ;;  %v1757_v24 = vpack.c.bf16 %v1642_v20, %v1637_v19  ;;  %v1647_v29 = vld [vmem:[%s3756_s10 + $0x570] sm:$0xff] }
 0x217   : > { %1949 = vmatprep.mubr.bf16.mxu1 %v1764_v39  ;;  %v2921_v44 = vpop.f32.mrb[76].mxu0  ;;  %2931 = vmatprep.subr.bf16.mxu0 %v1304_v41  ;;  %v1691_v39 = vpack.c.bf16 %v1511_v32, %v1506_v31  ;;  %v1657_v31 = vld [vmem:[%s3756_s10 + $0x5c0] sm:$0xff]  ;;  %v1662_v32 = vld [vmem:[%s3756_s10 + $0x5e8] sm:$0xff] }
 0x218   : > { %v1021_v45 = vadd.f32 %v2921_v44, %v3768_v56  ;;  %v1012_v46 = vpop.f32.mrb[77].mxu0  ;;  %2932 = vmatpush3.bf16.msra.mxu0 %v1304_v41  ;;  %v1717_v41 = vpack.c.bf16 %v1562_v37, %v1557_v36  ;;  %v1516_v44 = vld [vmem:[%s3756_s10 + $0x158] sm:$0xff]  ;;  %v1762_v36 = vpack.c.bf16 %v1652_v30, %v1647_v29  ;;  %v1767_v37 = vpack.c.bf16 %v1662_v32, %v1657_v31  ;;  %v1635_v32 = vld [vmem:[%s3756_s10 + $0x510] sm:$0xff] }
 0x219   : > { %v1013_v49 = vadd.f32 %v3768_v56, %v1012_v46  ;;  %v2922_v50 = vpop.f32.mrb[78].mxu0  ;;  %2933 = vmatprep.subr.bf16.mxu0 %v1305_v40  ;;  %v1567_v46 = vld [vmem:[%s3756_s10 + $0x2f0] sm:$0xff] }
 0x21a   : > { %v1024_v52 = vadd.f32 %v2922_v50, %v3768_v56  ;;  %v1015_v53 = vpop.f32.mrb[79].mxu0  ;;  %v1690_v50 = vpack.c.bf16 %v1510_v43, %v1505_v42  ;;  %v1667_v42 = vld [vmem:[%s3756_s10 + $0x610] sm:$0xff]  ;;  %v1672_v43 = vld [vmem:[%s3756_s10 + $0x638] sm:$0xff] }
 0x21b   : > { %v1016_v54 = vadd.f32 %v3768_v56, %v1015_v53  ;;  %v1492_v56 = vld [vmem:[%s3756_s10 + $0x98] sm:$0xff] }
 0x21c   : > { %v1307_v57 = vpack.c.bf16 %v1024_v52, %v1021_v45  ;;  %2934 = vmatpush3.bf16.msra.mxu0 %v1305_v40  ;;  %v1682_v4 = vpack.c.bf16 %v1492_v56, %v1487_v63  ;;  %v1712_v40 = vpack.c.bf16 %v1552_v35, %v1547_v34  ;;  %v1521_v45 = vld [vmem:[%s3756_s10 + $0x180] sm:$0xff]  ;;  %v1722_v52 = vpack.c.bf16 %v1572_v47, %v1567_v46 }
 0x21d   : > { %v1306_v58 = vpack.c.bf16 %v1016_v54, %v1013_v49  ;;  %v1582_v49 = vld [vmem:[%s3756_s10 + $0x368] sm:$0xff]  ;;  %v1515_v54 = vld [vmem:[%s3756_s10 + $0x150] sm:$0xff]  ;;  %v1772_v46 = vpack.c.bf16 %v1672_v43, %v1667_v42  ;;  %v1565_v47 = vld [vmem:[%s3756_s10 + $0x2e0] sm:$0xff] }
 0x21e   : > { %1950 = vmatmul.mubr.bf16.gmra.mrb[44].mxu1 %v1763_v51  ;;  %v1696_v51 = vpack.c.bf16 %v1521_v45, %v1516_v44  ;;  %v1727_v53 = vpack.c.bf16 %v1582_v49, %v1577_v48  ;;  %v1570_v48 = vld [vmem:[%s3756_s10 + $0x308] sm:$0xff]  ;;  %v1576_v49 = vld [vmem:[%s3756_s10 + $0x338] sm:$0xff]  ;;  %v1645_v43 = vld [vmem:[%s3756_s10 + $0x560] sm:$0xff] }
 0x21f   : > { %1957 = vmatprep.mubr.bf16.mxu1 %v1769_v55  ;;  %2935 = vmatprep.subr.bf16.mxu0 %v1306_v58  ;;  %v1520_v55 = vld [vmem:[%s3756_s10 + $0x178] sm:$0xff] }
 0x220   : > { %2936 = vmatpush3.bf16.msra.mxu0 %v1306_v58  ;;  %v1531_v58 = vld [vmem:[%s3756_s10 + $0x1d0] sm:$0xff]  ;;  %v1695_v63 = vpack.c.bf16 %v1520_v55, %v1515_v54  ;;  %v1580_v54 = vld [vmem:[%s3756_s10 + $0x358] sm:$0xff]  ;;  %v1586_v55 = vld [vmem:[%s3756_s10 + $0x388] sm:$0xff] }
 0x221   : > { %2937 = vmatprep.subr.bf16.mxu0 %v1307_v57 }
 0x224   : > { %2938 = vmatpush3.bf16.msra.mxu0 %v1307_v57  ;;  %v1526_v57 = vld [vmem:[%s3756_s10 + $0x1a8] sm:$0xff] }
 0x225   : > { %v1701_v56 = vpack.c.bf16 %v1531_v58, %v1526_v57  ;;  %v1591_v57 = vld [vmem:[%s3756_s10 + $0x3b0] sm:$0xff] }
 0x226   : > { %1958 = vmatmul.mubr.bf16.gmra.mrb[48].mxu1 %v1768_v2  ;;  %v1525_v2 = vld [vmem:[%s3756_s10 + $0x1a0] sm:$0xff]  ;;  %v1731_v59 = vpack.c.bf16 %v1591_v57, %v1586_v55  ;;  %v1666_v55 = vld [vmem:[%s3756_s10 + $0x608] sm:$0xff]  ;;  %v1671_v57 = vld [vmem:[%s3756_s10 + $0x630] sm:$0xff] }
 0x227   : > { %1998 = vmatprep.mubr.bf16.mxu1 %v1676_v3  ;;  %2940 = vmatmul.mubr.bf16.vlgmr.msra.gmra.mrb[108].mxu0 %v1682_v4  ;;  %v1530_v3 = vld [vmem:[%s3756_s10 + $0x1c8] sm:$0xff]  ;;  %v1536_v4 = vld [vmem:[%s3756_s10 + $0x1f8] sm:$0xff] }
 0x228   : > { %2943 = vmatprep.mubr.bf16.mxu0 %v1687_v5  ;;  %v1541_v5 = vld [vmem:[%s3756_s10 + $0x220] sm:$0xff]  ;;  %v1700_v10 = vpack.c.bf16 %v1530_v3, %v1525_v2  ;;  %v1600_v2 = vld [vmem:[%s3756_s10 + $0x3f8] sm:$0xff]  ;;  %v1606_v3 = vld [vmem:[%s3756_s10 + $0x428] sm:$0xff] }
 0x229   : > { %v1706_v11 = vpack.c.bf16 %v1541_v5, %v1536_v4  ;;  %v1611_v4 = vld [vmem:[%s3756_s10 + $0x450] sm:$0xff] }
 0x22a   : > { %v1741_v6 = vpack.c.bf16 %v1611_v4, %v1606_v3 }
 0x22e   : > { %1999 = vmatmul.mubr.bf16.vlgmr.msra.gmra.mrb[52].mxu1 %v1675_v13  ;;  %v1535_v13 = vld [vmem:[%s3756_s10 + $0x1f0] sm:$0xff] }
 0x22f   : > { %2006 = vmatprep.mubr.bf16.mxu1 %v1681_v14  ;;  %2944 = vmatmul.mubr.bf16.gmra.mrb[112].mxu0 %v1692_v15  ;;  %v1540_v14 = vld [vmem:[%s3756_s10 + $0x218] sm:$0xff]  ;;  %v1546_v15 = vld [vmem:[%s3756_s10 + $0x248] sm:$0xff] }
 0x230   : > { %2947 = vmatprep.mubr.bf16.mxu0 %v1697_v16  ;;  %v1551_v16 = vld [vmem:[%s3756_s10 + $0x270] sm:$0xff]  ;;  %v1705_v21 = vpack.c.bf16 %v1540_v14, %v1535_v13  ;;  %v1620_v13 = vld [vmem:[%s3756_s10 + $0x498] sm:$0xff]  ;;  %v1626_v14 = vld [vmem:[%s3756_s10 + $0x4c8] sm:$0xff] }
 0x231   : > { %v1711_v22 = vpack.c.bf16 %v1551_v16, %v1546_v15  ;;  %v1631_v15 = vld [vmem:[%s3756_s10 + $0x4f0] sm:$0xff] }
 0x232   : > { %v1751_v19 = vpack.c.bf16 %v1631_v15, %v1626_v14 }
 0x236   : > { %2007 = vmatmul.mubr.bf16.gmra.mrb[56].mxu1 %v1680_v25  ;;  %v1545_v25 = vld [vmem:[%s3756_s10 + $0x240] sm:$0xff] }
 0x237   : > { %2014 = vmatprep.mubr.bf16.mxu1 %v1686_v26  ;;  %2948 = vmatmul.mubr.bf16.gmra.mrb[116].mxu0 %v1702_v27  ;;  %v1550_v26 = vld [vmem:[%s3756_s10 + $0x268] sm:$0xff]  ;;  %v1556_v27 = vld [vmem:[%s3756_s10 + $0x298] sm:$0xff] }
 0x238   : > { %2951 = vmatprep.mubr.bf16.mxu0 %v1707_v28  ;;  %v1561_v28 = vld [vmem:[%s3756_s10 + $0x2c0] sm:$0xff]  ;;  %v1710_v34 = vpack.c.bf16 %v1550_v26, %v1545_v25 }
 0x239   : > { %v1716_v35 = vpack.c.bf16 %v1561_v28, %v1556_v27  ;;  %v1641_v25 = vld [vmem:[%s3756_s10 + $0x540] sm:$0xff] }
 0x23e   : > { %2015 = vmatmul.mubr.bf16.gmra.mrb[60].mxu1 %v1685_v38  ;;  %v1555_v38 = vld [vmem:[%s3756_s10 + $0x290] sm:$0xff] }
 0x23f   : > { %2022 = vmatprep.mubr.bf16.mxu1 %v1691_v39  ;;  %2952 = vmatmul.mubr.bf16.gmra.mrb[120].mxu0 %v1712_v40  ;;  %v1560_v39 = vld [vmem:[%s3756_s10 + $0x2b8] sm:$0xff]  ;;  %v1566_v40 = vld [vmem:[%s3756_s10 + $0x2e8] sm:$0xff] }
 0x240   : > { %2955 = vmatprep.mubr.bf16.mxu0 %v1717_v41  ;;  %v1571_v41 = vld [vmem:[%s3756_s10 + $0x310] sm:$0xff]  ;;  %v1715_v44 = vpack.c.bf16 %v1560_v39, %v1555_v38 }
 0x241   : > { %v1721_v45 = vpack.c.bf16 %v1571_v41, %v1566_v40 }
 0x246   : > { %2023 = vmatmul.mubr.bf16.gmra.mrb[64].mxu1 %v1690_v50  ;;  %v1581_v50 = vld [vmem:[%s3756_s10 + $0x360] sm:$0xff] }
 0x247   : > { %2030 = vmatprep.mubr.bf16.mxu1 %v1696_v51  ;;  %2956 = vmatmul.mubr.bf16.gmra.mrb[124].mxu0 %v1722_v52  ;;  %v1720_v51 = vpack.c.bf16 %v1570_v48, %v1565_v47  ;;  %v1726_v52 = vpack.c.bf16 %v1581_v50, %v1576_v49 }
 0x248   : > { %2959 = vmatprep.mubr.bf16.mxu0 %v1727_v53  ;;  %v1575_v53 = vld [vmem:[%s3756_s10 + $0x330] sm:$0xff] }
 0x249   : > { %v1725_v58 = vpack.c.bf16 %v1580_v54, %v1575_v53  ;;  %v1655_v53 = vld [vmem:[%s3756_s10 + $0x5b0] sm:$0xff]  ;;  %v1660_v54 = vld [vmem:[%s3756_s10 + $0x5d8] sm:$0xff] }
 0x24e   : > { %2031 = vmatmul.mubr.bf16.gmra.mrb[68].mxu1 %v1695_v63  ;;  %v1601_v63 = vld [vmem:[%s3756_s10 + $0x400] sm:$0xff] }
 0x24f   : > { %2038 = vmatprep.mubr.bf16.mxu1 %v1701_v56  ;;  %2960 = vmatmul.mubr.bf16.gmra.mrb[128].mxu0 %v1732_v0  ;;  %v1730_v56 = vpack.c.bf16 %v1590_v61, %v1585_v60  ;;  %v1736_v0 = vpack.c.bf16 %v1601_v63, %v1596_v62  ;;  %v1771_v61 = vpack.c.bf16 %v1671_v57, %v1666_v55 }
 0x250   : > { %2963 = vmatprep.mubr.bf16.mxu0 %v1737_v1  ;;  %v1595_v1 = vld [vmem:[%s3756_s10 + $0x3d0] sm:$0xff] }
 0x251   : > { %v1735_v5 = vpack.c.bf16 %v1600_v2, %v1595_v1 }
 0x256   : > { %2039 = vmatmul.mubr.bf16.gmra.mrb[72].mxu1 %v1700_v10  ;;  %v1621_v10 = vld [vmem:[%s3756_s10 + $0x4a0] sm:$0xff] }
 0x257   : > { %2046 = vmatprep.mubr.bf16.mxu1 %v1706_v11  ;;  %2964 = vmatmul.mubr.bf16.gmra.mrb[132].mxu0 %v1742_v33  ;;  %v1740_v11 = vpack.c.bf16 %v1610_v8, %v1605_v7  ;;  %v1746_v33 = vpack.c.bf16 %v1621_v10, %v1616_v9 }
 0x258   : > { %2967 = vmatprep.mubr.bf16.mxu0 %v1747_v12  ;;  %v1615_v12 = vld [vmem:[%s3756_s10 + $0x470] sm:$0xff] }
 0x259   : > { %v1745_v17 = vpack.c.bf16 %v1620_v13, %v1615_v12 }
 0x25e   : > { %2047 = vmatmul.mubr.bf16.gmra.mrb[76].mxu1 %v1705_v21 }
 0x25f   : > { %2054 = vmatprep.mubr.bf16.mxu1 %v1711_v22  ;;  %2968 = vmatmul.mubr.bf16.gmra.mrb[136].mxu0 %v1752_v23  ;;  %v1625_v22 = vld [vmem:[%s3756_s10 + $0x4c0] sm:$0xff]  ;;  %v1630_v23 = vld [vmem:[%s3756_s10 + $0x4e8] sm:$0xff] }
 0x260   : > { %2971 = vmatprep.mubr.bf16.mxu0 %v1757_v24  ;;  %v1636_v24 = vld [vmem:[%s3756_s10 + $0x518] sm:$0xff]  ;;  %v1750_v27 = vpack.c.bf16 %v1630_v23, %v1625_v22 }
 0x261   : > { %v1756_v29 = vpack.c.bf16 %v1641_v25, %v1636_v24 }
 0x266   : > { %2055 = vmatmul.mubr.bf16.gmra.mrb[0].mxu1 %v1710_v34  ;;  %v1640_v34 = vld [vmem:[%s3756_s10 + $0x538] sm:$0xff] }
 0x267   : > { %2062 = vmatprep.mubr.bf16.mxu1 %v1716_v35  ;;  %2972 = vmatmul.mubr.bf16.gmra.mrb[140].mxu0 %v1762_v36  ;;  %v1646_v35 = vld [vmem:[%s3756_s10 + $0x568] sm:$0xff]  ;;  %v1651_v36 = vld [vmem:[%s3756_s10 + $0x590] sm:$0xff]  ;;  %v1755_v38 = vpack.c.bf16 %v1640_v34, %v1635_v32 }
 0x268   : > { %2975 = vmatprep.mubr.bf16.mxu0 %v1767_v37  ;;  %v1761_v40 = vpack.c.bf16 %v1651_v36, %v1646_v35 }
 0x26e   : > { %2063 = vmatmul.mubr.bf16.gmra.mrb[4].mxu1 %v1715_v44  ;;  %v1650_v44 = vld [vmem:[%s3756_s10 + $0x588] sm:$0xff] }
 0x26f   : > { %2070 = vmatprep.mubr.bf16.mxu1 %v1721_v45  ;;  %2976 = vmatmul.mubr.bf16.gmra.mrb[144].mxu0 %v1772_v46  ;;  %v1656_v45 = vld [vmem:[%s3756_s10 + $0x5b8] sm:$0xff]  ;;  %v1661_v46 = vld [vmem:[%s3756_s10 + $0x5e0] sm:$0xff]  ;;  %v1760_v48 = vpack.c.bf16 %v1650_v44, %v1645_v43 }
 0x270   : > { %v1766_v50 = vpack.c.bf16 %v1661_v46, %v1656_v45 }
 0x276   : > { %2071 = vmatmul.mubr.bf16.gmra.mrb[8].mxu1 %v1720_v51 }
 0x277   : > { %2078 = vmatprep.mubr.bf16.mxu1 %v1726_v52 }
 0x27e   : > { %2079 = vmatmul.mubr.bf16.gmra.mrb[12].mxu1 %v1725_v58 }
 0x27f   : > { %2086 = vmatprep.mubr.bf16.mxu1 %v1731_v59  ;;  %v1765_v59 = vpack.c.bf16 %v1660_v54, %v1655_v53 }
 0x286   : > { %2087 = vmatmul.mubr.bf16.gmra.mrb[16].mxu1 %v1730_v56  ;;  %v1665_v56 = vld [vmem:[%s3756_s10 + $0x600] sm:$0xff] }
 0x287   : > { %2094 = vmatprep.mubr.bf16.mxu1 %v1736_v0  ;;  %v1670_v0 = vld [vmem:[%s3756_s10 + $0x628] sm:$0xff] }
 0x288   : > { %v1770_v2 = vpack.c.bf16 %v1670_v0, %v1665_v56 }
 0x28e   : > { %2095 = vmatmul.mubr.bf16.gmra.mrb[20].mxu1 %v1735_v5 }
 0x28f   : > { %2102 = vmatprep.mubr.bf16.mxu1 %v1741_v6 }
 0x296   : > { %2103 = vmatmul.mubr.bf16.gmra.mrb[24].mxu1 %v1740_v11 }
 0x297   : > { %2110 = vmatprep.mubr.bf16.mxu1 %v1746_v33 }
 0x299   : > { %v4074_v16 = vpop.f32.mrb[80].mxu0 }
 0x29a   : > { %v1809_v18 = vpop.f32.mrb[81].mxu0 }
 0x29b   : > { %v4076_v20 = vpop.f32.mrb[82].mxu0 }
 0x29c   : > { %v1812_v21 = vpop.f32.mrb[83].mxu0 }
 0x29e   : > { %2111 = vmatmul.mubr.bf16.gmra.mrb[28].mxu1 %v1745_v17 }
 0x29f   : > { %2118 = vmatprep.mubr.bf16.mxu1 %v1751_v19 }
 0x2a1   : > { %v4082_v26 = vpop.f32.mrb[84].mxu0 }
 0x2a2   : > { %v1817_v28 = vpop.f32.mrb[85].mxu0 }
 0x2a3   : > { %v4084_v30 = vpop.f32.mrb[86].mxu0 }
 0x2a4   : > { %v1820_v31 = vpop.f32.mrb[87].mxu0 }
 0x2a6   : > { %2119 = vmatmul.mubr.bf16.gmra.mrb[32].mxu1 %v1750_v27 }
 0x2a7   : > { %2126 = vmatprep.mubr.bf16.mxu1 %v1756_v29 }
 0x2a9   : > { %v4090_v37 = vpop.f32.mrb[88].mxu0 }
 0x2aa   : > { %v1825_v39 = vpop.f32.mrb[89].mxu0 }
 0x2ab   : > { %v4092_v41 = vpop.f32.mrb[90].mxu0 }
 0x2ac   : > { %v1828_v42 = vpop.f32.mrb[91].mxu0 }
 0x2ae   : > { %2127 = vmatmul.mubr.bf16.gmra.mrb[36].mxu1 %v1755_v38 }
 0x2af   : > { %2134 = vmatprep.mubr.bf16.mxu1 %v1761_v40 }
 0x2b1   : > { %v4098_v47 = vpop.f32.mrb[92].mxu0 }
 0x2b2   : > { %v1833_v49 = vpop.f32.mrb[93].mxu0 }
 0x2b3   : > { %v4100_v51 = vpop.f32.mrb[94].mxu0 }
 0x2b4   : > { %v1836_v52 = vpop.f32.mrb[95].mxu0 }
 0x2b6   : > { %2135 = vmatmul.mubr.bf16.gmra.mrb[40].mxu1 %v1760_v48 }
 0x2b7   : > { %2142 = vmatprep.mubr.bf16.mxu1 %v1766_v50 }
 0x2b9   : > { %v4106_v58 = vpop.f32.mrb[96].mxu0 }
 0x2ba   : > { %v1841_v60 = vpop.f32.mrb[97].mxu0 }
 0x2bb   : > { %v4108_v62 = vpop.f32.mrb[98].mxu0 }
 0x2bc   : > { %v1844_v63 = vpop.f32.mrb[99].mxu0 }
 0x2be   : > { %2143 = vmatmul.mubr.bf16.gmra.mrb[44].mxu1 %v1765_v59 }
 0x2bf   : > { %2150 = vmatprep.mubr.bf16.mxu1 %v1771_v61 }
 0x2c1   : > { %v4112_v1 = vpop.f32.mrb[100].mxu0 }
 0x2c2   : > { %v1849_v3 = vpop.f32.mrb[101].mxu0 }
 0x2c3   : > { %v4114_v4 = vpop.f32.mrb[102].mxu0 }
 0x2c4   : > { %v1852_v5 = vpop.f32.mrb[103].mxu0 }
 0x2c6   : > { %2151 = vmatmul.mubr.bf16.gmra.mrb[48].mxu1 %v1770_v2 }
 0x2c9   : > { %v4116_v6 = vpop.f32.mrb[104].mxu0 }
 0x2ca   : > { %v1857_v7 = vpop.f32.mrb[105].mxu0 }
 0x2cb   : > { %v4118_v8 = vpop.f32.mrb[106].mxu0 }
 0x2cc   : > { %v1860_v9 = vpop.f32.mrb[107].mxu0 }
 0x2fa   : > { %v2941_v10 = vpop.f32.mrb[108].mxu0 }
 0x2fb   : > { %v2193_v11 = vpop.f32.mrb[109].mxu0 }
 0x2fc   : > { %v2942_v33 = vpop.f32.mrb[110].mxu0 }
 0x2fd   : > { %v2196_v12 = vpop.f32.mrb[111].mxu0 }
 0x301   : > { %v2000_v13 = vpop.f32.mrb[52].mxu1 }
 0x302   : > { %v2001_v14 = vadd.f32 %v2000_v13, %v4074_v16  ;;  %v2002_v15 = vpop.f32.mrb[53].mxu1  ;;  %v2945_v17 = vpop.f32.mrb[112].mxu0 }
 0x303   : > { %v2003_v18 = vpop.f32.mrb[54].mxu1  ;;  %v2209_v19 = vpop.f32.mrb[113].mxu0 }
 0x304   : > { %v2004_v21 = vadd.f32 %v2003_v18, %v4076_v20  ;;  %v2194_v22 = vadd.f32 %v2193_v11, %v2001_v14  ;;  %v2005_v23 = vpop.f32.mrb[55].mxu1  ;;  %v2946_v24 = vpop.f32.mrb[114].mxu0 }
 0x305   : > { %v2212_v25 = vpop.f32.mrb[115].mxu0 }
 0x306   : > { %v2197_v27 = vadd.f32 %v2196_v12, %v2004_v21  ;;  %3231 = vtanh.f32 %v2194_v22 }
 0x308   : > { %3233 = vtanh.f32 %v2197_v27 }
 0x309   : > { %v2008_v28 = vpop.f32.mrb[56].mxu1 }
 0x30a   : > { %v2009_v29 = vadd.f32 %v2008_v28, %v4082_v26  ;;  %v2010_v31 = vpop.f32.mrb[57].mxu1  ;;  %v4123_v32 = vpop.f32.mrb[116].mxu0 }
 0x30b   : > { %v2011_v16 = vpop.f32.mrb[58].mxu1  ;;  %v2225_v34 = vpop.f32.mrb[117].mxu0 }
 0x30c   : > { %v2202_v35 = vadd.f32 %v2941_v10, %v2009_v29  ;;  %v2012_v36 = vadd.f32 %v2011_v16, %v4084_v30  ;;  %v2013_v20 = vpop.f32.mrb[59].mxu1  ;;  %v4127_v38 = vpop.f32.mrb[118].mxu0 }
 0x30d   : > { %v2228_v39 = vpop.f32.mrb[119].mxu0 }
 0x30e   : > { %v2205_v40 = vadd.f32 %v2942_v33, %v2012_v36  ;;  %3235 = vtanh.f32 %v2202_v35 }
 0x310   : > { %v3232_v43 = vpop.eup %3231  ;;  %3237 = vtanh.f32 %v2205_v40 }
 0x311   : > { %v2016_v42 = vpop.f32.mrb[60].mxu1  ;;  %2515 = vst [vmem:[%s4132_s25] sm:$0xff] %v3232_v43 }
 0x312   : > { %v2017_v26 = vadd.f32 %v2016_v42, %v4090_v37  ;;  %v2018_v44 = vpop.f32.mrb[61].mxu1  ;;  %v4130_v45 = vpop.f32.mrb[120].mxu0 }
 0x313   : > { %v2019_v30 = vpop.f32.mrb[62].mxu1  ;;  %v4135_v46 = vpop.f32.mrb[121].mxu0 }
 0x314   : > { %v3234_v48 = vpop.eup %3233  ;;  %v2020_v49 = vadd.f32 %v2019_v30, %v4092_v41  ;;  %v2210_v50 = vadd.f32 %v2209_v19, %v2017_v26  ;;  %v2021_v52 = vpop.f32.mrb[63].mxu1 }
 0x315   : > { %v4138_v53 = vpop.f32.mrb[122].mxu0  ;;  %2516 = vst [vmem:[%s4132_s25 + $0x8] sm:$0xff] %v3234_v48 }
 0x316   : > { %v4141_v37 = vpop.f32.mrb[123].mxu0  ;;  %v2213_v54 = vadd.f32 %v2212_v25, %v2020_v49  ;;  %3239 = vtanh.f32 %v2210_v50 }
 0x318   : > { %v3236_v57 = vpop.eup %3235  ;;  %3241 = vtanh.f32 %v2213_v54 }
 0x319   : > { %v2024_v55 = vpop.f32.mrb[64].mxu1  ;;  %2517 = vst [vmem:[%s4132_s25 + $0x10] sm:$0xff] %v3236_v57 }
 0x31a   : > { %v2025_v59 = vadd.f32 %v2024_v55, %v4098_v47  ;;  %v2026_v60 = vpop.f32.mrb[65].mxu1  ;;  %v4144_v61 = vpop.f32.mrb[124].mxu0 }
 0x31b   : > { %v2027_v41 = vpop.f32.mrb[66].mxu1  ;;  %v4147_v63 = vpop.f32.mrb[125].mxu0 }
 0x31c   : > { %v3238_v56 = vpop.eup %3237  ;;  %v2218_v0 = vadd.f32 %v2945_v17, %v2025_v59  ;;  %v2028_v2 = vadd.f32 %v2027_v41, %v4100_v51  ;;  %v2029_v3 = vpop.f32.mrb[67].mxu1 }
 0x31d   : > { %v4150_v5 = vpop.f32.mrb[126].mxu0  ;;  %2518 = vst [vmem:[%s4132_s25 + $0x18] sm:$0xff] %v3238_v56 }
 0x31e   : > { %v4153_v7 = vpop.f32.mrb[127].mxu0  ;;  %v2221_v9 = vadd.f32 %v2946_v24, %v2028_v2  ;;  %3243 = vtanh.f32 %v2218_v0 }
 0x320   : > { %v3240_v10 = vpop.eup %3239  ;;  %3245 = vtanh.f32 %v2221_v9 }
 0x321   : > { %v2032_v47 = vpop.f32.mrb[68].mxu1  ;;  %2519 = vst [vmem:[%s4132_s25 + $0x20] sm:$0xff] %v3240_v10 }
 0x322   : > { %v2033_v11 = vadd.f32 %v2032_v47, %v4106_v58  ;;  %v2034_v33 = vpop.f32.mrb[69].mxu1  ;;  %v4156_v12 = vpop.f32.mrb[128].mxu0 }
 0x323   : > { %v2035_v13 = vpop.f32.mrb[70].mxu1  ;;  %v4159_v51 = vpop.f32.mrb[129].mxu0 }
 0x324   : > { %v3242_v14 = vpop.eup %3241  ;;  %v2036_v15 = vadd.f32 %v2035_v13, %v4108_v62  ;;  %v2226_v17 = vadd.f32 %v2225_v34, %v2033_v11  ;;  %v2037_v18 = vpop.f32.mrb[71].mxu1 }
 0x325   : > { %v4162_v19 = vpop.f32.mrb[130].mxu0  ;;  %2520 = vst [vmem:[%s4132_s25 + $0x28] sm:$0xff] %v3242_v14 }
 0x326   : > { %v4165_v21 = vpop.f32.mrb[131].mxu0  ;;  %v2229_v22 = vadd.f32 %v2228_v39, %v2036_v15  ;;  %3247 = vtanh.f32 %v2226_v17 }
 0x328   : > { %v3244_v23 = vpop.eup %3243  ;;  %3249 = vtanh.f32 %v2229_v22 }
 0x329   : > { %v2040_v58 = vpop.f32.mrb[72].mxu1  ;;  %2521 = vst [vmem:[%s4132_s25 + $0x30] sm:$0xff] %v3244_v23 }
 0x32a   : > { %v2041_v24 = vadd.f32 %v2040_v58, %v4112_v1  ;;  %v2042_v25 = vpop.f32.mrb[73].mxu1  ;;  %v4168_v27 = vpop.f32.mrb[132].mxu0 }
 0x32b   : > { %v2043_v62 = vpop.f32.mrb[74].mxu1  ;;  %v4171_v28 = vpop.f32.mrb[133].mxu0 }
 0x32c   : > { %v3246_v29 = vpop.eup %3245  ;;  %v2234_v31 = vadd.f32 %v4123_v32, %v2041_v24  ;;  %v2044_v16 = vadd.f32 %v2043_v62, %v4114_v4  ;;  %v2045_v34 = vpop.f32.mrb[75].mxu1 }
 0x32d   : > { %v4175_v35 = vpop.f32.mrb[134].mxu0  ;;  %2522 = vst [vmem:[%s4132_s25 + $0x38] sm:$0xff] %v3246_v29 }
 0x32e   : > { %v4178_v36 = vpop.f32.mrb[135].mxu0  ;;  %v2237_v1 = vadd.f32 %v4127_v38, %v2044_v16  ;;  %3251 = vtanh.f32 %v2234_v31 }
 0x330   : > { %v3248_v39 = vpop.eup %3247  ;;  %3253 = vtanh.f32 %v2237_v1 }
 0x331   : > { %v2048_v20 = vpop.f32.mrb[76].mxu1  ;;  %2523 = vst [vmem:[%s4132_s25 + $0x40] sm:$0xff] %v3248_v39 }
 0x332   : > { %v2049_v40 = vadd.f32 %v2048_v20, %v4116_v6  ;;  %v2050_v42 = vpop.f32.mrb[77].mxu1  ;;  %v4182_v43 = vpop.f32.mrb[136].mxu0 }
 0x333   : > { %v2051_v4 = vpop.f32.mrb[78].mxu1  ;;  %v4185_v32 = vpop.f32.mrb[137].mxu0 }
 0x334   : > { %v3250_v26 = vpop.eup %3249  ;;  %v2052_v44 = vadd.f32 %v2051_v4, %v4118_v8  ;;  %v2242_v38 = vadd.f32 %v4135_v46, %v2049_v40  ;;  %v2053_v30 = vpop.f32.mrb[79].mxu1 }
 0x335   : > { %v4189_v48 = vpop.f32.mrb[138].mxu0  ;;  %2524 = vst [vmem:[%s4132_s25 + $0x48] sm:$0xff] %v3250_v26 }
 0x336   : > { %v4192_v49 = vpop.f32.mrb[139].mxu0  ;;  %v2245_v6 = vadd.f32 %v4141_v37, %v2052_v44  ;;  %3255 = vtanh.f32 %v2242_v38 }
 0x338   : > { %v3252_v52 = vpop.eup %3251  ;;  %3257 = vtanh.f32 %v2245_v6 }
 0x339   : > { %v2056_v50 = vpop.f32.mrb[0].mxu1  ;;  %2525 = vst [vmem:[%s4132_s25 + $0x50] sm:$0xff] %v3252_v52 }
 0x33a   : > { %v2250_v54 = vadd.f32 %v4130_v45, %v2056_v50  ;;  %v2058_v55 = vpop.f32.mrb[1].mxu1  ;;  %v4196_v57 = vpop.f32.mrb[140].mxu0 }
 0x33b   : > { %v2059_v8 = vpop.f32.mrb[2].mxu1  ;;  %v4199_v46 = vpop.f32.mrb[141].mxu0 }
 0x33c   : > { %v3254_v59 = vpop.eup %3253  ;;  %v2253_v60 = vadd.f32 %v4138_v53, %v2059_v8  ;;  %v2061_v41 = vpop.f32.mrb[3].mxu1  ;;  %3259 = vtanh.f32 %v2250_v54 }
 0x33d   : > { %v4202_v56 = vpop.f32.mrb[142].mxu0  ;;  %2526 = vst [vmem:[%s4132_s25 + $0x58] sm:$0xff] %v3254_v59 }
 0x33e   : > { %v4205_v37 = vpop.f32.mrb[143].mxu0  ;;  %3261 = vtanh.f32 %v2253_v60 }
 0x340   : > { %v3256_v0 = vpop.eup %3255 }
 0x341   : > { %v2064_v45 = vpop.f32.mrb[4].mxu1  ;;  %2527 = vst [vmem:[%s4132_s25 + $0x60] sm:$0xff] %v3256_v0 }
 0x342   : > { %v2258_v2 = vadd.f32 %v4147_v63, %v2064_v45  ;;  %v2066_v3 = vpop.f32.mrb[5].mxu1  ;;  %v4208_v9 = vpop.f32.mrb[144].mxu0 }
 0x343   : > { %v2067_v47 = vpop.f32.mrb[6].mxu1  ;;  %v4211_v53 = vpop.f32.mrb[145].mxu0 }
 0x344   : > { %v3258_v10 = vpop.eup %3257  ;;  %v2261_v11 = vadd.f32 %v4153_v7, %v2067_v47  ;;  %v2069_v33 = vpop.f32.mrb[7].mxu1  ;;  %3263 = vtanh.f32 %v2258_v2 }
 0x345   : > { %v4214_v13 = vpop.f32.mrb[146].mxu0  ;;  %2528 = vst [vmem:[%s4132_s25 + $0x68] sm:$0xff] %v3258_v10 }
 0x346   : > { %v4217_v14 = vpop.f32.mrb[147].mxu0  ;;  %v3260_v63 = vpop.eup %3259  ;;  %3265 = vtanh.f32 %v2261_v11 }
 0x347   : > { %2529 = vst [vmem:[%s4132_s25 + $0x70] sm:$0xff] %v3260_v63 }
 0x348   : > { %v3262_v17 = vpop.eup %3261 }
 0x349   : > { %v2072_v15 = vpop.f32.mrb[8].mxu1  ;;  %2530 = vst [vmem:[%s4132_s25 + $0x78] sm:$0xff] %v3262_v17 }
 0x34a   : > { %v2266_v18 = vadd.f32 %v4144_v61, %v2072_v15  ;;  %v2074_v22 = vpop.f32.mrb[9].mxu1 }
 0x34b   : > { %v2075_v58 = vpop.f32.mrb[10].mxu1 }
 0x34c   : > { %v2269_v7 = vadd.f32 %v4150_v5, %v2075_v58  ;;  %v2077_v23 = vpop.f32.mrb[11].mxu1  ;;  %3267 = vtanh.f32 %v2266_v18 }
 0x34e   : > { %v3264_v24 = vpop.eup %3263  ;;  %3269 = vtanh.f32 %v2269_v7 }
 0x34f   : > { %2531 = vst [vmem:[%s4132_s25 + $0x80] sm:$0xff] %v3264_v24 }
 0x350   : > { %v3266_v62 = vpop.eup %3265 }
 0x351   : > { %v2080_v25 = vpop.f32.mrb[12].mxu1  ;;  %2532 = vst [vmem:[%s4132_s25 + $0x88] sm:$0xff] %v3266_v62 }
 0x352   : > { %v2274_v29 = vadd.f32 %v4159_v51, %v2080_v25  ;;  %v2082_v31 = vpop.f32.mrb[13].mxu1 }
 0x353   : > { %v2083_v16 = vpop.f32.mrb[14].mxu1 }
 0x354   : > { %v2277_v61 = vadd.f32 %v4165_v21, %v2083_v16  ;;  %v2085_v34 = vpop.f32.mrb[15].mxu1  ;;  %3271 = vtanh.f32 %v2274_v29 }
 0x356   : > { %v3268_v5 = vpop.eup %3267  ;;  %3273 = vtanh.f32 %v2277_v61 }
 0x357   : > { %2533 = vst [vmem:[%s4132_s25 + $0x90] sm:$0xff] %v3268_v5 }
 0x358   : > { %v3270_v20 = vpop.eup %3269 }
 0x359   : > { %v2088_v1 = vpop.f32.mrb[16].mxu1  ;;  %2534 = vst [vmem:[%s4132_s25 + $0x98] sm:$0xff] %v3270_v20 }
 0x35a   : > { %v2282_v39 = vadd.f32 %v4156_v12, %v2088_v1  ;;  %v2090_v40 = vpop.f32.mrb[17].mxu1 }
 0x35b   : > { %v2091_v42 = vpop.f32.mrb[18].mxu1 }
 0x35c   : > { %v2285_v51 = vadd.f32 %v4162_v19, %v2091_v42  ;;  %v2093_v4 = vpop.f32.mrb[19].mxu1  ;;  %3275 = vtanh.f32 %v2282_v39 }
 0x35e   : > { %v3272_v21 = vpop.eup %3271  ;;  %3277 = vtanh.f32 %v2285_v51 }
 0x35f   : > { %2535 = vst [vmem:[%s4132_s25 + $0xa0] sm:$0xff] %v3272_v21 }
 0x360   : > { %v3274_v44 = vpop.eup %3273 }
 0x361   : > { %v2096_v26 = vpop.f32.mrb[20].mxu1  ;;  %2536 = vst [vmem:[%s4132_s25 + $0xa8] sm:$0xff] %v3274_v44 }
 0x362   : > { %v2290_v38 = vadd.f32 %v4171_v28, %v2096_v26  ;;  %v2098_v30 = vpop.f32.mrb[21].mxu1 }
 0x363   : > { %v2099_v6 = vpop.f32.mrb[22].mxu1 }
 0x364   : > { %v2293_v12 = vadd.f32 %v4178_v36, %v2099_v6  ;;  %v2101_v50 = vpop.f32.mrb[23].mxu1  ;;  %3279 = vtanh.f32 %v2290_v38 }
 0x366   : > { %v3276_v19 = vpop.eup %3275  ;;  %3281 = vtanh.f32 %v2293_v12 }
 0x367   : > { %2537 = vst [vmem:[%s4132_s25 + $0xb0] sm:$0xff] %v3276_v19 }
 0x368   : > { %v3278_v54 = vpop.eup %3277 }
 0x369   : > { %v2104_v52 = vpop.f32.mrb[24].mxu1  ;;  %2538 = vst [vmem:[%s4132_s25 + $0xb8] sm:$0xff] %v3278_v54 }
 0x36a   : > { %v2298_v55 = vadd.f32 %v4168_v27, %v2104_v52  ;;  %v2106_v8 = vpop.f32.mrb[25].mxu1 }
 0x36b   : > { %v2107_v59 = vpop.f32.mrb[26].mxu1 }
 0x36c   : > { %v2301_v28 = vadd.f32 %v4175_v35, %v2107_v59  ;;  %v2109_v60 = vpop.f32.mrb[27].mxu1  ;;  %3283 = vtanh.f32 %v2298_v55 }
 0x36e   : > { %v3280_v36 = vpop.eup %3279  ;;  %3285 = vtanh.f32 %v2301_v28 }
 0x36f   : > { %2539 = vst [vmem:[%s4132_s25 + $0xc0] sm:$0xff] %v3280_v36 }
 0x370   : > { %v3282_v45 = vpop.eup %3281 }
 0x371   : > { %v2112_v41 = vpop.f32.mrb[28].mxu1  ;;  %2540 = vst [vmem:[%s4132_s25 + $0xc8] sm:$0xff] %v3282_v45 }
 0x372   : > { %v2306_v0 = vadd.f32 %v4185_v32, %v2112_v41  ;;  %v2114_v2 = vpop.f32.mrb[29].mxu1 }
 0x373   : > { %v2115_v3 = vpop.f32.mrb[30].mxu1 }
 0x374   : > { %v2309_v27 = vadd.f32 %v4192_v49, %v2115_v3  ;;  %v2117_v47 = vpop.f32.mrb[31].mxu1  ;;  %3287 = vtanh.f32 %v2306_v0 }
 0x376   : > { %v3284_v35 = vpop.eup %3283  ;;  %3289 = vtanh.f32 %v2309_v27 }
 0x377   : > { %2541 = vst [vmem:[%s4132_s25 + $0xd0] sm:$0xff] %v3284_v35 }
 0x378   : > { %v3286_v11 = vpop.eup %3285 }
 0x379   : > { %v2120_v10 = vpop.f32.mrb[32].mxu1  ;;  %2542 = vst [vmem:[%s4132_s25 + $0xd8] sm:$0xff] %v3286_v11 }
 0x37a   : > { %v2314_v33 = vadd.f32 %v4182_v43, %v2120_v10  ;;  %v2122_v63 = vpop.f32.mrb[33].mxu1 }
 0x37b   : > { %v2123_v15 = vpop.f32.mrb[34].mxu1 }
 0x37c   : > { %v2317_v32 = vadd.f32 %v4189_v48, %v2123_v15  ;;  %v2125_v17 = vpop.f32.mrb[35].mxu1  ;;  %3291 = vtanh.f32 %v2314_v33 }
 0x37e   : > { %v3288_v49 = vpop.eup %3287  ;;  %3293 = vtanh.f32 %v2317_v32 }
 0x37f   : > { %2543 = vst [vmem:[%s4132_s25 + $0xe0] sm:$0xff] %v3288_v49 }
 0x380   : > { %v3290_v22 = vpop.eup %3289 }
 0x381   : > { %v2128_v18 = vpop.f32.mrb[36].mxu1  ;;  %2544 = vst [vmem:[%s4132_s25 + $0xe8] sm:$0xff] %v3290_v22 }
 0x382   : > { %v2322_v58 = vadd.f32 %v4199_v46, %v2128_v18  ;;  %v2130_v7 = vpop.f32.mrb[37].mxu1 }
 0x383   : > { %v2131_v23 = vpop.f32.mrb[38].mxu1 }
 0x384   : > { %v2325_v43 = vadd.f32 %v4205_v37, %v2131_v23  ;;  %v2133_v24 = vpop.f32.mrb[39].mxu1  ;;  %3295 = vtanh.f32 %v2322_v58 }
 0x386   : > { %v3292_v48 = vpop.eup %3291  ;;  %3297 = vtanh.f32 %v2325_v43 }
 0x387   : > { %2545 = vst [vmem:[%s4132_s25 + $0xf0] sm:$0xff] %v3292_v48 }
 0x388   : > { %v3294_v62 = vpop.eup %3293 }
 0x389   : > { %v2136_v25 = vpop.f32.mrb[40].mxu1  ;;  %2546 = vst [vmem:[%s4132_s25 + $0xf8] sm:$0xff] %v3294_v62 }
 0x38a   : > { %v2330_v29 = vadd.f32 %v4196_v57, %v2136_v25  ;;  %v2138_v31 = vpop.f32.mrb[41].mxu1 }
 0x38b   : > { %v2139_v16 = vpop.f32.mrb[42].mxu1 }
 0x38c   : > { %v2333_v46 = vadd.f32 %v4202_v56, %v2139_v16  ;;  %v2141_v61 = vpop.f32.mrb[43].mxu1  ;;  %3299 = vtanh.f32 %v2330_v29 }
 0x38e   : > { %v3296_v37 = vpop.eup %3295  ;;  %3301 = vtanh.f32 %v2333_v46 }
 0x38f   : > { %2547 = vst [vmem:[%s4132_s25 + $0x100] sm:$0xff] %v3296_v37 }
 0x390   : > { %v3298_v5 = vpop.eup %3297 }
 0x391   : > { %v2144_v34 = vpop.f32.mrb[44].mxu1  ;;  %2548 = vst [vmem:[%s4132_s25 + $0x108] sm:$0xff] %v3298_v5 }
 0x392   : > { %v2338_v1 = vadd.f32 %v4211_v53, %v2144_v34  ;;  %v2146_v20 = vpop.f32.mrb[45].mxu1 }
 0x393   : > { %v2147_v39 = vpop.f32.mrb[46].mxu1 }
 0x394   : > { %v2341_v57 = vadd.f32 %v4217_v14, %v2147_v39  ;;  %v2149_v40 = vpop.f32.mrb[47].mxu1  ;;  %3303 = vtanh.f32 %v2338_v1 }
 0x396   : > { %v3300_v56 = vpop.eup %3299  ;;  %3305 = vtanh.f32 %v2341_v57 }
 0x397   : > { %2549 = vst [vmem:[%s4132_s25 + $0x110] sm:$0xff] %v3300_v56 }
 0x398   : > { %v3302_v51 = vpop.eup %3301 }
 0x399   : > { %v2152_v42 = vpop.f32.mrb[48].mxu1  ;;  %2550 = vst [vmem:[%s4132_s25 + $0x118] sm:$0xff] %v3302_v51 }
 0x39a   : > { %v2346_v4 = vadd.f32 %v4208_v9, %v2152_v42  ;;  %v2154_v21 = vpop.f32.mrb[49].mxu1 }
 0x39b   : > { %v2155_v53 = vpop.f32.mrb[50].mxu1 }
 0x39c   : > { %v2349_v14 = vadd.f32 %v4214_v13, %v2155_v53  ;;  %v2157_v26 = vpop.f32.mrb[51].mxu1  ;;  %3307 = vtanh.f32 %v2346_v4 }
 0x39e   : > { %v3304_v44 = vpop.eup %3303  ;;  %3309 = vtanh.f32 %v2349_v14 }
 0x39f   : > { %2551 = vst [vmem:[%s4132_s25 + $0x120] sm:$0xff] %v3304_v44 }
 0x3a0   : > { %v3306_v38 = vpop.eup %3305 }
 0x3a1   : > { %2552 = vst [vmem:[%s4132_s25 + $0x128] sm:$0xff] %v3306_v38 }
 0x3a6   : > { %v3308_v30 = vpop.eup %3307 }
 0x3a7   : > { %2553 = vst [vmem:[%s4132_s25 + $0x130] sm:$0xff] %v3308_v30 }
 0x3a8   : > { %v3310_v9 = vpop.eup %3309 }
 0x3a9   : > { %2554 = vst [vmem:[%s4132_s25 + $0x138] sm:$0xff] %v3310_v9 }
 0x3aa   : > { %3438 = shalt.err (!%p3435_p5)
}
 0x3ab   : > { %s3439_s11 = scalar_lea.hbm %s4270_s7, 5120  ;;  %s3443_s27 = scalar_lea.hbm %s4327_s4, 10240 }
 0x3ac   : > { %p3440_p10 = scmp.ne.s32.totalorder %s4270_s7, %s3439_s11  ;;  %p3444_p3 = scmp.lt.u32.totalorder %s4270_s7, %s4327_s4 }
 0x3ad   : > { %p3445_p7 = scmp.lt.u32.totalorder %s3443_s27, %s3439_s11  ;;  %p3447_p2 = scmp.lt.u32.totalorder %s3439_s11, %s4270_s7 }
 0x3ae   : > { %p3441_p13 = pnand %p3440_p10, %p3688_p6 }
 0x3af   : > { %p3446_p11 = por %p3445_p7, %p3444_p3 }
 0x3b0   : > { %p3442_p1 = pneg %p3441_p13 }
 0x3b1   : > { %p3448_p4 = por %p3447_p2, %p3446_p11 }
 0x3b3   : > { %p3449_p8 = pnand %p3448_p4, %p3442_p1 }
 0x3b5   : > { %3452 = shalt.err (!%p3449_p8)
}
 0x3b6   : > { %s3527_s23 = smov 128   ;;  %s3528_s25 = smov 8  }
 0x3b7   : > { %3095 = dma.vmem_to_hbm [thread:$0]  (%p3688_p6), %s4272_s21, 5120, %s4270_s7, %s2556_s9, %s3527_s23, %s3527_s23, %s3528_s25  }
 0x3b8 PF: > { %s4349_s14 = sld [smem:[#allocation16_spill]]  ;;  %s4350_s28 = sld [smem:[#allocation17_spill]] }
 0x3b9   : > { %p4352_p12 = scmp.ge.s32.totalorder %s3515_s20, 2 }
 0x3be   : > { %s2584_s12 = sand.u32 1, %s4349_s14   ;;  %p4351_p9 = scmp.ne.s32.totalorder %s4350_s28, 0 }
 0x3bf   : > { %s2585_s5 = scalar_lea.sflag [#allocation5], %s2584_s12 }
 0x3c0   : > { %p3112_p0 = pnand %p4352_p12, %p4351_p9 }
 0x3c2   : > { %3490 = dma.done.wait (!%p3112_p0), %s2585_s5, 5120  }
 0x3c3   : > { %3492 = vsyncadd (!%p3112_p0), %s2585_s5, 4294962176  ;;  %s22_s20 = sadd.s32 1, %s3515_s20   ;;  %s4353_s15 = smov %s3499_s16 }
 0x3c4   : > { %p19_p5 = scmp.ge.s32.totalorder %s22_s20, 4   ;;  %s4354_s16 = smov %s3503_s17 }
 0x3c5   : > { %s4355_s17 = smov %s3703_s24  ;;  %s4356_s18 = smov %s3511_s19 }
 0x3c6   : > { %s4357_s19 = smov %s4359_s29  ;;  %21 = sbr.rel (!%p19_p5) target bundleno = 8 (0x8), region = 103 }
 0x3cd   :  { %2590 = vsyncpa [#allocation4], 1 }
 0x3ce   :  { %2592 = vsyncpa [#allocation4 + $0x1], 1 }
 0x3cf   :  { %2593 = vsyncpa [#allocation7], 1 }
 0x3d0   :  { %2594 = vsyncpa [#allocation10], 1 }
 0x3d1   :  { %2596 = vsyncpa [#allocation10 + $0x1], 1 }
 0x3d2   :  { %2597 = vsyncpa [#allocation5], 1 }
 0x3d3   :  { %2599 = vsyncpa [#allocation5 + $0x1], 1 }

</bundles_post_ra>
